<compile_context>
chip_gen: v7x
topology: tpu7x:2x2x1
jax: 0.10.0
libtpu: 0.0.40
codegen_flags: <defaults>
</compile_context>

<pallas_src>
import numpy as np
from functools import partial

import jax
import jax.numpy as jnp
from jax.experimental import pallas as pl
from jax.experimental.pallas import tpu as pltpu

ACTION_EMB_DIM = 6
TARGET_EMB_DIM = 18


def decoder_kernel(w_in_ref,    # (N, 4H)  f32  fused one-hot -> gates table
                   whh_ref,     # (H, 4H)  f32  recurrent weights (transposed)
                   bg_ref,      # (1, 4H)  f32  b_ih + b_hh
                   w_head_ref,  # (H, N)   f32  fused action/target heads (transposed)
                   bh_ref,      # (1, N)   f32  fused head bias
                   h0_ref,      # (B, H)   f32
                   c0_ref,      # (B, H)   f32
                   out_ref,     # (T, B, N) f32 combined logits, time-major
                   *, action_enc_size):
    B, H = h0_ref.shape
    N = w_head_ref.shape[1]          # A + Tg
    A = action_enc_size
    T = out_ref.shape[0]
    f32 = jnp.float32

    # Hoisted loop invariants: load weights/biases into vregs once.
    w_in = w_in_ref[...]
    whh = whh_ref[...]
    bg = bg_ref[...]
    w_head = w_head_ref[...]
    bh = bh_ref[...]

    # Combined class-column iota (action cols 0..A-1, target cols A..N-1).
    cols_i = jax.lax.broadcasted_iota(jnp.int32, (B, N), 1)
    cols_f = cols_i.astype(f32)      # small ints exact in f32 (safe lane min-reduce)
    is_action = cols_i < A
    neg = jnp.float32(-1e30)
    sentinel = jnp.float32(N)

    # t = 0: start token -> actions[:, 1, 0] = 1, targets[:, 1, 0] = 1.
    oh0 = ((cols_i == 1) | (cols_i == A + 1)).astype(f32)    # (B, N)
    out_ref[0] = oh0

    def step(i, carry):
        h, c, oh = carry
        # LSTM cell (PyTorch gate order i, f, g, o along the 4H lane axis).
        # One dot for the folded embedding+input projection, one recurrent dot,
        # plus the bias broadcast.
        gates = (jnp.dot(oh, w_in, preferred_element_type=f32)
                 + jnp.dot(h, whh, preferred_element_type=f32)
                 + bg)                                       # (B, 4H)

        # Two full-vreg EUP pushes cover all four gates; slice afterwards.
        sig = jax.nn.sigmoid(gates)
        tnh = jnp.tanh(gates)
        i_g = sig[:, 0 * H:1 * H]
        f_g = sig[:, 1 * H:2 * H]
        g_g = tnh[:, 2 * H:3 * H]
        o_g = sig[:, 3 * H:4 * H]
        c_new = f_g * c + i_g * g_g
        h_new = o_g * jnp.tanh(c_new)

        # Fused heads: one dot + one lane-dense store per step.
        logits = jnp.dot(h_new, w_head, preferred_element_type=f32) + bh  # (B, N)
        out_ref[i] = logits

        # Greedy feedback (torch.argmax semantics: first index of the max),
        # computed per head with masked max + min-of-iota lane reductions on
        # the single (B, N) vreg.
        a_mx = jnp.max(jnp.where(is_action, logits, neg), axis=1, keepdims=True)
        t_mx = jnp.max(jnp.where(is_action, neg, logits), axis=1, keepdims=True)
        a_idx = jnp.min(jnp.where(is_action & (logits >= a_mx), cols_f, sentinel),
                        axis=1, keepdims=True)
        t_idx = jnp.min(jnp.where((~is_action) & (logits >= t_mx), cols_f, sentinel),
                        axis=1, keepdims=True)
        oh_new = ((cols_f == a_idx) | (cols_f == t_idx)).astype(f32)
        return h_new, c_new, oh_new

    jax.lax.fori_loop(1, T, step, (h0_ref[...], c0_ref[...], oh0), unroll=True)


def make_params(key, action_enc_size, target_enc_size, hidden_size):
    A, Tg, H = action_enc_size, target_enc_size, hidden_size
    ks = jax.random.split(key, 10)
    s = 0.3
    f = jnp.float32
    return {
        "a_emb": jax.random.normal(ks[0], (A, ACTION_EMB_DIM), f) * s,
        "t_emb": jax.random.normal(ks[1], (Tg, TARGET_EMB_DIM), f) * s,
        "w_ih":  jax.random.normal(ks[2], (4 * H, ACTION_EMB_DIM + TARGET_EMB_DIM), f) * s,
        "w_hh":  jax.random.normal(ks[3], (4 * H, H), f) * s,
        "b_ih":  jax.random.normal(ks[4], (4 * H,), f) * s,
        "b_hh":  jax.random.normal(ks[5], (4 * H,), f) * s,
        "w_a":   jax.random.normal(ks[6], (A, H), f) * s,
        "b_a":   jax.random.normal(ks[7], (A,), f) * s,
        "w_t":   jax.random.normal(ks[8], (Tg, H), f) * s,
        "b_t":   jax.random.normal(ks[9], (Tg,), f) * s,
    }


@partial(jax.jit, static_argnums=(3,))
def decoder_forward(params, h0, c0, timesteps):
    """JAX wrapper: weight folding / transposes around a single Pallas call."""
    _, B, H = h0.shape
    A = params["w_a"].shape[0]
    Tg = params["w_t"].shape[0]
    N = A + Tg
    T = timesteps
    f32 = jnp.float32
    hp = partial(jnp.dot, precision=jax.lax.Precision.HIGHEST)

    # Fold embedding tables into the input projection (batch-major form):
    #   cat(a_emb[a], t_emb[t]) @ W_ih.T == onehot_combined @ W_in,
    #   W_in = [a_emb @ W_ih[:, :6].T ; t_emb @ W_ih[:, 6:].T]   -> (N, 4H)
    w_ih = params["w_ih"]
    w_in = jnp.concatenate(
        [hp(params["a_emb"], w_ih[:, :ACTION_EMB_DIM].T),     # (A, 4H)
         hp(params["t_emb"], w_ih[:, ACTION_EMB_DIM:].T)],    # (Tg, 4H)
        axis=0).astype(f32)                                    # (N, 4H)
    whh = params["w_hh"].T.astype(f32)                         # (H, 4H)
    bg = (params["b_ih"] + params["b_hh"])[None, :].astype(f32)            # (1, 4H)
    w_head = jnp.concatenate([params["w_a"], params["w_t"]],
                             axis=0).T.astype(f32)                          # (H, N)
    bh = jnp.concatenate([params["b_a"], params["b_t"]])[None, :].astype(f32)  # (1, N)

    vmem = lambda: pl.BlockSpec(memory_space=pltpu.MemorySpace.VMEM)
    out_tbn = pl.pallas_call(
        partial(decoder_kernel, action_enc_size=A),
        out_shape=jax.ShapeDtypeStruct((T, B, N), f32),
        in_specs=[vmem() for _ in range(7)],
        out_specs=vmem(),
    )(w_in, whh, bg, w_head, bh, h0[0], c0[0])

    # Back to PyTorch layout: (B, A, T) / (B, Tg, T).
    out_bnt = jnp.transpose(out_tbn, (1, 2, 0))
    return out_bnt[:, :A, :], out_bnt[:, A:, :]


def reference_forward(params, h0, c0, T):
    """Pure-JAX f32 mirror of the PyTorch loop (teacher_forcing=False)."""
    B, H = h0.shape[1], h0.shape[2]
    A = params["w_a"].shape[0]
    Tg = params["w_t"].shape[0]
    hp = partial(jnp.dot, precision=jax.lax.Precision.HIGHEST)

    actions = jnp.zeros((B, A, T), jnp.float32).at[:, 1, 0].set(1.0)
    targets = jnp.zeros((B, Tg, T), jnp.float32).at[:, 1, 0].set(1.0)
    h, c = h0[0], c0[0]
    for i in range(1, T):
        a_idx = jnp.argmax(actions[:, :, i - 1], axis=1)
        t_idx = jnp.argmax(targets[:, :, i - 1], axis=1)
        x = jnp.concatenate([params["a_emb"][a_idx], params["t_emb"][t_idx]], axis=-1)
        gates = hp(x, params["w_ih"].T) + hp(h, params["w_hh"].T) + params["b_ih"] + params["b_hh"]
        i_g = jax.nn.sigmoid(gates[:, 0 * H:1 * H])
        f_g = jax.nn.sigmoid(gates[:, 1 * H:2 * H])
        g_g = jnp.tanh(gates[:, 2 * H:3 * H])
        o_g = jax.nn.sigmoid(gates[:, 3 * H:4 * H])
        c = f_g * c + i_g * g_g
        h = o_g * jnp.tanh(c)
        actions = actions.at[:, :, i].set(hp(h, params["w_a"].T) + params["b_a"])
        targets = targets.at[:, :, i].set(hp(h, params["w_t"].T) + params["b_t"])
    return actions, targets


if __name__ == "__main__":
    # Small shapes consistent with the module.
    B = 2
    hidden_size = 32
    action_enc_size = 8
    target_enc_size = 10
    instr_cutoff = 6
    T = instr_cutoff + 2          # self.instr_cutoff = instr_cutoff + 2

    key = jax.random.PRNGKey(0)
    kp, kh, kc, kl = jax.random.split(key, 4)
    params = make_params(kp, action_enc_size, target_enc_size, hidden_size)
    h0 = jax.random.normal(kh, (1, B, hidden_size), jnp.float32) * 0.5
    c0 = jax.random.normal(kc, (1, B, hidden_size), jnp.float32) * 0.5
    # labels are only consumed when teacher_forcing=True; the default
    # configuration (teacher_forcing=False) feeds greedy argmax predictions back.
    labels = jax.random.randint(kl, (B, T, 2), 0, min(action_enc_size, target_enc_size))
    # TODO(synk): teacher_forcing=True branch (label-driven embeddings) not implemented.

    acts, tgts = decoder_forward(params, h0, c0, T)
    acts, tgts = jax.block_until_ready((acts, tgts))

    ref_a, ref_t = reference_forward(params, h0, c0, T)

    assert acts.shape == (B, action_enc_size, T)
    assert tgts.shape == (B, target_enc_size, T)
    na, nt = np.asarray(acts), np.asarray(tgts)
    assert np.all(np.isfinite(na)) and np.all(np.isfinite(nt))
    # All timesteps validated against the pure-f32 reference.  The kernel keeps
    # every dot in f32, so the only differences are MXU-pass rounding; an
    # argmax flip (feedback divergence) would show up as an O(1) mismatch.
    np.testing.assert_allclose(na, np.asarray(ref_a), rtol=5e-2, atol=5e-2)
    np.testing.assert_allclose(nt, np.asarray(ref_t), rtol=5e-2, atol=5e-2)

    print("KERNEL_OK")
</pallas_src>

<mosaic_0001>
module attributes {stable_mosaic.version = 11 : i64} {
  func.func @decoder_kernel(%arg0: memref<18x128xf32, #tpu.memory_space<vmem>>, %arg1: memref<32x128xf32, #tpu.memory_space<vmem>>, %arg2: memref<1x128xf32, #tpu.memory_space<vmem>>, %arg3: memref<32x18xf32, #tpu.memory_space<vmem>>, %arg4: memref<1x18xf32, #tpu.memory_space<vmem>>, %arg5: memref<2x32xf32, #tpu.memory_space<vmem>>, %arg6: memref<2x32xf32, #tpu.memory_space<vmem>>, %arg7: memref<8x2x18xf32, #tpu.memory_space<vmem>>) attributes {dimension_semantics = [], scalar_prefetch = 0 : i64, scratch_operands = 0 : i64, tpu.core_type = #tpu.core_type<tc>} {
    %c0 = arith.constant 0 : index
    %c0_0 = arith.constant 0 : index
    %0 = vector.load %arg0[%c0, %c0_0] : memref<18x128xf32, #tpu.memory_space<vmem>>, vector<18x128xf32>
    %c0_1 = arith.constant 0 : index
    %c0_2 = arith.constant 0 : index
    %1 = vector.load %arg1[%c0_1, %c0_2] : memref<32x128xf32, #tpu.memory_space<vmem>>, vector<32x128xf32>
    %c0_3 = arith.constant 0 : index
    %c0_4 = arith.constant 0 : index
    %2 = vector.load %arg2[%c0_3, %c0_4] : memref<1x128xf32, #tpu.memory_space<vmem>>, vector<1x128xf32>
    %c0_5 = arith.constant 0 : index
    %c0_6 = arith.constant 0 : index
    %3 = vector.load %arg3[%c0_5, %c0_6] : memref<32x18xf32, #tpu.memory_space<vmem>>, vector<32x18xf32>
    %c0_7 = arith.constant 0 : index
    %c0_8 = arith.constant 0 : index
    %4 = vector.load %arg4[%c0_7, %c0_8] : memref<1x18xf32, #tpu.memory_space<vmem>>, vector<1x18xf32>
    %5 = tpu.iota {dimensions = array<i32: 1>} : vector<2x18xi32>
    %6 = arith.sitofp %5 : vector<2x18xi32> to vector<2x18xf32>
    %c8_i32 = arith.constant 8 : i32
    %7 = vector.broadcast %c8_i32 : i32 to vector<2x18xi32>
    %8 = arith.cmpi slt, %5, %7 : vector<2x18xi32>
    %c1_i32 = arith.constant 1 : i32
    %9 = vector.broadcast %c1_i32 : i32 to vector<2x18xi32>
    %10 = arith.cmpi eq, %5, %9 : vector<2x18xi32>
    %c9_i32 = arith.constant 9 : i32
    %11 = vector.broadcast %c9_i32 : i32 to vector<2x18xi32>
    %12 = arith.cmpi eq, %5, %11 : vector<2x18xi32>
    %13 = arith.ori %10, %12 : vector<2x18xi1>
    %14 = arith.extui %13 : vector<2x18xi1> to vector<2x18xi32>
    %15 = arith.sitofp %14 : vector<2x18xi32> to vector<2x18xf32>
    %c0_9 = arith.constant 0 : index
    %c0_10 = arith.constant 0 : index
    %c0_11 = arith.constant 0 : index
    %16 = vector.load %arg7[%c0_9, %c0_10, %c0_11] : memref<8x2x18xf32, #tpu.memory_space<vmem>>, vector<1x2x18xf32>
    %17 = vector.shape_cast %16 : vector<1x2x18xf32> to vector<2x18xf32>
    %18 = vector.shape_cast %15 : vector<2x18xf32> to vector<1x2x18xf32>
    tpu.vector_store %arg7[%c0_9, %c0_10, %c0_11], %18 {strides = array<i32>} : memref<8x2x18xf32, #tpu.memory_space<vmem>>, vector<1x2x18xf32>,
    %c0_12 = arith.constant 0 : index
    %c0_13 = arith.constant 0 : index
    %19 = vector.load %arg5[%c0_12, %c0_13] : memref<2x32xf32, #tpu.memory_space<vmem>>, vector<2x32xf32>
    %c0_14 = arith.constant 0 : index
    %c0_15 = arith.constant 0 : index
    %20 = vector.load %arg6[%c0_14, %c0_15] : memref<2x32xf32, #tpu.memory_space<vmem>>, vector<2x32xf32>
    %cst = arith.constant -1.000000e+30 : f32
    %cst_16 = arith.constant 1.800000e+01 : f32
    %c1_i32_17 = arith.constant 1 : i32
    %cst_18 = arith.constant dense<0.000000e+00> : vector<2x128xf32>
    %21 = tpu.matmul %15, %0, %cst_18 {dimension_numbers = #tpu.dot_dimension_numbers<[1], [0], [0], [1], [0, 0, 1, 1], [], []>} : vector<2x18xf32>, vector<18x128xf32>, vector<2x128xf32> -> vector<2x128xf32>
    %cst_19 = arith.constant dense<0.000000e+00> : vector<2x128xf32>
    %22 = tpu.matmul %19, %1, %cst_19 {dimension_numbers = #tpu.dot_dimension_numbers<[1], [0], [0], [1], [0, 0, 1, 1], [], []>} : vector<2x32xf32>, vector<32x128xf32>, vector<2x128xf32> -> vector<2x128xf32>
    %23 = arith.addf %21, %22 : vector<2x128xf32>
    %24 = vector.broadcast %2 : vector<1x128xf32> to vector<2x128xf32>
    %25 = arith.addf %23, %24 : vector<2x128xf32>
    %26 = arith.negf %25 : vector<2x128xf32>
    %27 = math.exp %26 : vector<2x128xf32>
    %cst_20 = arith.constant 1.000000e+00 : f32
    %28 = vector.broadcast %cst_20 : f32 to vector<2x128xf32>
    %29 = arith.addf %28, %27 : vector<2x128xf32>
    %30 = arith.divf %28, %29 : vector<2x128xf32>
    %31 = math.tanh %25 : vector<2x128xf32>
    %32 = vector.extract_strided_slice %30 {offsets = [0, 0], sizes = [2, 32], strides = [1, 1]} : vector<2x128xf32> to vector<2x32xf32>
    %33 = vector.extract_strided_slice %30 {offsets = [0, 32], sizes = [2, 32], strides = [1, 1]} : vector<2x128xf32> to vector<2x32xf32>
    %34 = vector.extract_strided_slice %31 {offsets = [0, 64], sizes = [2, 32], strides = [1, 1]} : vector<2x128xf32> to vector<2x32xf32>
    %35 = vector.extract_strided_slice %30 {offsets = [0, 96], sizes = [2, 32], strides = [1, 1]} : vector<2x128xf32> to vector<2x32xf32>
    %36 = arith.mulf %33, %20 : vector<2x32xf32>
    %37 = arith.mulf %32, %34 : vector<2x32xf32>
    %38 = arith.addf %36, %37 : vector<2x32xf32>
    %39 = math.tanh %38 : vector<2x32xf32>
    %40 = arith.mulf %35, %39 : vector<2x32xf32>
    %cst_21 = arith.constant dense<0.000000e+00> : vector<2x18xf32>
    %41 = tpu.matmul %40, %3, %cst_21 {dimension_numbers = #tpu.dot_dimension_numbers<[1], [0], [0], [1], [0, 0, 1, 1], [], []>} : vector<2x32xf32>, vector<32x18xf32>, vector<2x18xf32> -> vector<2x18xf32>
    %42 = vector.broadcast %4 : vector<1x18xf32> to vector<2x18xf32>
    %43 = arith.addf %41, %42 : vector<2x18xf32>
    %44 = arith.index_cast %c1_i32_17 : i32 to index
    %c0_22 = arith.constant 0 : index
    %c0_23 = arith.constant 0 : index
    %45 = vector.load %arg7[%44, %c0_22, %c0_23] : memref<8x2x18xf32, #tpu.memory_space<vmem>>, vector<1x2x18xf32>
    %46 = vector.shape_cast %45 : vector<1x2x18xf32> to vector<2x18xf32>
    %47 = vector.shape_cast %43 : vector<2x18xf32> to vector<1x2x18xf32>
    tpu.vector_store %arg7[%44, %c0_22, %c0_23], %47 {strides = array<i32>} : memref<8x2x18xf32, #tpu.memory_space<vmem>>, vector<1x2x18xf32>,
    %48 = vector.broadcast %cst : f32 to vector<2x18xf32>
    %49 = arith.select %8, %43, %48 : vector<2x18xi1>, vector<2x18xf32>
    %cst_24 = arith.constant dense<0xFF800000> : vector<2xf32>
    %50 = vector.multi_reduction <maximumf>, %49, %cst_24 [1] : vector<2x18xf32> to vector<2xf32>
    %51 = vector.shape_cast %50 : vector<2xf32> to vector<2x1xf32>
    %52 = vector.broadcast %cst : f32 to vector<2x18xf32>
    %53 = arith.select %8, %52, %43 : vector<2x18xi1>, vector<2x18xf32>
    %cst_25 = arith.constant dense<0xFF800000> : vector<2xf32>
    %54 = vector.multi_reduction <maximumf>, %53, %cst_25 [1] : vector<2x18xf32> to vector<2xf32>
    %55 = vector.shape_cast %54 : vector<2xf32> to vector<2x1xf32>
    %56 = vector.broadcast %51 : vector<2x1xf32> to vector<2x18xf32>
    %57 = arith.cmpf oge, %43, %56 : vector<2x18xf32>
    %58 = arith.andi %8, %57 : vector<2x18xi1>
    %59 = vector.broadcast %cst_16 : f32 to vector<2x18xf32>
    %60 = arith.select %58, %6, %59 : vector<2x18xi1>, vector<2x18xf32>
    %cst_26 = arith.constant dense<0x7F800000> : vector<2xf32>
    %61 = vector.multi_reduction <minimumf>, %60, %cst_26 [1] : vector<2x18xf32> to vector<2xf32>
    %62 = vector.shape_cast %61 : vector<2xf32> to vector<2x1xf32>
    %cst_27 = arith.constant dense<true> : vector<2x18xi1>
    %63 = arith.xori %8, %cst_27 : vector<2x18xi1>
    %64 = vector.broadcast %55 : vector<2x1xf32> to vector<2x18xf32>
    %65 = arith.cmpf oge, %43, %64 : vector<2x18xf32>
    %66 = arith.andi %63, %65 : vector<2x18xi1>
    %67 = vector.broadcast %cst_16 : f32 to vector<2x18xf32>
    %68 = arith.select %66, %6, %67 : vector<2x18xi1>, vector<2x18xf32>
    %cst_28 = arith.constant dense<0x7F800000> : vector<2xf32>
    %69 = vector.multi_reduction <minimumf>, %68, %cst_28 [1] : vector<2x18xf32> to vector<2xf32>
    %70 = vector.shape_cast %69 : vector<2xf32> to vector<2x1xf32>
    %71 = vector.broadcast %62 : vector<2x1xf32> to vector<2x18xf32>
    %72 = arith.cmpf oeq, %6, %71 : vector<2x18xf32>
    %73 = vector.broadcast %70 : vector<2x1xf32> to vector<2x18xf32>
    %74 = arith.cmpf oeq, %6, %73 : vector<2x18xf32>
    %75 = arith.ori %72, %74 : vector<2x18xi1>
    %76 = arith.extui %75 : vector<2x18xi1> to vector<2x18xi32>
    %77 = arith.sitofp %76 : vector<2x18xi32> to vector<2x18xf32>
    %c2_i32 = arith.constant 2 : i32
    %cst_29 = arith.constant dense<0.000000e+00> : vector<2x128xf32>
    %78 = tpu.matmul %77, %0, %cst_29 {dimension_numbers = #tpu.dot_dimension_numbers<[1], [0], [0], [1], [0, 0, 1, 1], [], []>} : vector<2x18xf32>, vector<18x128xf32>, vector<2x128xf32> -> vector<2x128xf32>
    %cst_30 = arith.constant dense<0.000000e+00> : vector<2x128xf32>
    %79 = tpu.matmul %40, %1, %cst_30 {dimension_numbers = #tpu.dot_dimension_numbers<[1], [0], [0], [1], [0, 0, 1, 1], [], []>} : vector<2x32xf32>, vector<32x128xf32>, vector<2x128xf32> -> vector<2x128xf32>
    %80 = arith.addf %78, %79 : vector<2x128xf32>
    %81 = vector.broadcast %2 : vector<1x128xf32> to vector<2x128xf32>
    %82 = arith.addf %80, %81 : vector<2x128xf32>
    %83 = arith.negf %82 : vector<2x128xf32>
    %84 = math.exp %83 : vector<2x128xf32>
    %cst_31 = arith.constant 1.000000e+00 : f32
    %85 = vector.broadcast %cst_31 : f32 to vector<2x128xf32>
    %86 = arith.addf %85, %84 : vector<2x128xf32>
    %87 = arith.divf %85, %86 : vector<2x128xf32>
    %88 = math.tanh %82 : vector<2x128xf32>
    %89 = vector.extract_strided_slice %87 {offsets = [0, 0], sizes = [2, 32], strides = [1, 1]} : vector<2x128xf32> to vector<2x32xf32>
    %90 = vector.extract_strided_slice %87 {offsets = [0, 32], sizes = [2, 32], strides = [1, 1]} : vector<2x128xf32> to vector<2x32xf32>
    %91 = vector.extract_strided_slice %88 {offsets = [0, 64], sizes = [2, 32], strides = [1, 1]} : vector<2x128xf32> to vector<2x32xf32>
    %92 = vector.extract_strided_slice %87 {offsets = [0, 96], sizes = [2, 32], strides = [1, 1]} : vector<2x128xf32> to vector<2x32xf32>
    %93 = arith.mulf %90, %38 : vector<2x32xf32>
    %94 = arith.mulf %89, %91 : vector<2x32xf32>
    %95 = arith.addf %93, %94 : vector<2x32xf32>
    %96 = math.tanh %95 : vector<2x32xf32>
    %97 = arith.mulf %92, %96 : vector<2x32xf32>
    %cst_32 = arith.constant dense<0.000000e+00> : vector<2x18xf32>
    %98 = tpu.matmul %97, %3, %cst_32 {dimension_numbers = #tpu.dot_dimension_numbers<[1], [0], [0], [1], [0, 0, 1, 1], [], []>} : vector<2x32xf32>, vector<32x18xf32>, vector<2x18xf32> -> vector<2x18xf32>
    %99 = vector.broadcast %4 : vector<1x18xf32> to vector<2x18xf32>
    %100 = arith.addf %98, %99 : vector<2x18xf32>
    %101 = arith.index_cast %c2_i32 : i32 to index
    %c0_33 = arith.constant 0 : index
    %c0_34 = arith.constant 0 : index
    %102 = vector.load %arg7[%101, %c0_33, %c0_34] : memref<8x2x18xf32, #tpu.memory_space<vmem>>, vector<1x2x18xf32>
    %103 = vector.shape_cast %102 : vector<1x2x18xf32> to vector<2x18xf32>
    %104 = vector.shape_cast %100 : vector<2x18xf32> to vector<1x2x18xf32>
    tpu.vector_store %arg7[%101, %c0_33, %c0_34], %104 {strides = array<i32>} : memref<8x2x18xf32, #tpu.memory_space<vmem>>, vector<1x2x18xf32>,
    %105 = vector.broadcast %cst : f32 to vector<2x18xf32>
    %106 = arith.select %8, %100, %105 : vector<2x18xi1>, vector<2x18xf32>
    %cst_35 = arith.constant dense<0xFF800000> : vector<2xf32>
    %107 = vector.multi_reduction <maximumf>, %106, %cst_35 [1] : vector<2x18xf32> to vector<2xf32>
    %108 = vector.shape_cast %107 : vector<2xf32> to vector<2x1xf32>
    %109 = vector.broadcast %cst : f32 to vector<2x18xf32>
    %110 = arith.select %8, %109, %100 : vector<2x18xi1>, vector<2x18xf32>
    %cst_36 = arith.constant dense<0xFF800000> : vector<2xf32>
    %111 = vector.multi_reduction <maximumf>, %110, %cst_36 [1] : vector<2x18xf32> to vector<2xf32>
    %112 = vector.shape_cast %111 : vector<2xf32> to vector<2x1xf32>
    %113 = vector.broadcast %108 : vector<2x1xf32> to vector<2x18xf32>
    %114 = arith.cmpf oge, %100, %113 : vector<2x18xf32>
    %115 = arith.andi %8, %114 : vector<2x18xi1>
    %116 = vector.broadcast %cst_16 : f32 to vector<2x18xf32>
    %117 = arith.select %115, %6, %116 : vector<2x18xi1>, vector<2x18xf32>
    %cst_37 = arith.constant dense<0x7F800000> : vector<2xf32>
    %118 = vector.multi_reduction <minimumf>, %117, %cst_37 [1] : vector<2x18xf32> to vector<2xf32>
    %119 = vector.shape_cast %118 : vector<2xf32> to vector<2x1xf32>
    %cst_38 = arith.constant dense<true> : vector<2x18xi1>
    %120 = arith.xori %8, %cst_38 : vector<2x18xi1>
    %121 = vector.broadcast %112 : vector<2x1xf32> to vector<2x18xf32>
    %122 = arith.cmpf oge, %100, %121 : vector<2x18xf32>
    %123 = arith.andi %120, %122 : vector<2x18xi1>
    %124 = vector.broadcast %cst_16 : f32 to vector<2x18xf32>
    %125 = arith.select %123, %6, %124 : vector<2x18xi1>, vector<2x18xf32>
    %cst_39 = arith.constant dense<0x7F800000> : vector<2xf32>
    %126 = vector.multi_reduction <minimumf>, %125, %cst_39 [1] : vector<2x18xf32> to vector<2xf32>
    %127 = vector.shape_cast %126 : vector<2xf32> to vector<2x1xf32>
    %128 = vector.broadcast %119 : vector<2x1xf32> to vector<2x18xf32>
    %129 = arith.cmpf oeq, %6, %128 : vector<2x18xf32>
    %130 = vector.broadcast %127 : vector<2x1xf32> to vector<2x18xf32>
    %131 = arith.cmpf oeq, %6, %130 : vector<2x18xf32>
    %132 = arith.ori %129, %131 : vector<2x18xi1>
    %133 = arith.extui %132 : vector<2x18xi1> to vector<2x18xi32>
    %134 = arith.sitofp %133 : vector<2x18xi32> to vector<2x18xf32>
    %c3_i32 = arith.constant 3 : i32
    %cst_40 = arith.constant dense<0.000000e+00> : vector<2x128xf32>
    %135 = tpu.matmul %134, %0, %cst_40 {dimension_numbers = #tpu.dot_dimension_numbers<[1], [0], [0], [1], [0, 0, 1, 1], [], []>} : vector<2x18xf32>, vector<18x128xf32>, vector<2x128xf32> -> vector<2x128xf32>
    %cst_41 = arith.constant dense<0.000000e+00> : vector<2x128xf32>
    %136 = tpu.matmul %97, %1, %cst_41 {dimension_numbers = #tpu.dot_dimension_numbers<[1], [0], [0], [1], [0, 0, 1, 1], [], []>} : vector<2x32xf32>, vector<32x128xf32>, vector<2x128xf32> -> vector<2x128xf32>
    %137 = arith.addf %135, %136 : vector<2x128xf32>
    %138 = vector.broadcast %2 : vector<1x128xf32> to vector<2x128xf32>
    %139 = arith.addf %137, %138 : vector<2x128xf32>
    %140 = arith.negf %139 : vector<2x128xf32>
    %141 = math.exp %140 : vector<2x128xf32>
    %cst_42 = arith.constant 1.000000e+00 : f32
    %142 = vector.broadcast %cst_42 : f32 to vector<2x128xf32>
    %143 = arith.addf %142, %141 : vector<2x128xf32>
    %144 = arith.divf %142, %143 : vector<2x128xf32>
    %145 = math.tanh %139 : vector<2x128xf32>
    %146 = vector.extract_strided_slice %144 {offsets = [0, 0], sizes = [2, 32], strides = [1, 1]} : vector<2x128xf32> to vector<2x32xf32>
    %147 = vector.extract_strided_slice %144 {offsets = [0, 32], sizes = [2, 32], strides = [1, 1]} : vector<2x128xf32> to vector<2x32xf32>
    %148 = vector.extract_strided_slice %145 {offsets = [0, 64], sizes = [2, 32], strides = [1, 1]} : vector<2x128xf32> to vector<2x32xf32>
    %149 = vector.extract_strided_slice %144 {offsets = [0, 96], sizes = [2, 32], strides = [1, 1]} : vector<2x128xf32> to vector<2x32xf32>
    %150 = arith.mulf %147, %95 : vector<2x32xf32>
    %151 = arith.mulf %146, %148 : vector<2x32xf32>
    %152 = arith.addf %150, %151 : vector<2x32xf32>
    %153 = math.tanh %152 : vector<2x32xf32>
    %154 = arith.mulf %149, %153 : vector<2x32xf32>
    %cst_43 = arith.constant dense<0.000000e+00> : vector<2x18xf32>
    %155 = tpu.matmul %154, %3, %cst_43 {dimension_numbers = #tpu.dot_dimension_numbers<[1], [0], [0], [1], [0, 0, 1, 1], [], []>} : vector<2x32xf32>, vector<32x18xf32>, vector<2x18xf32> -> vector<2x18xf32>
    %156 = vector.broadcast %4 : vector<1x18xf32> to vector<2x18xf32>
    %157 = arith.addf %155, %156 : vector<2x18xf32>
    %158 = arith.index_cast %c3_i32 : i32 to index
    %c0_44 = arith.constant 0 : index
    %c0_45 = arith.constant 0 : index
    %159 = vector.load %arg7[%158, %c0_44, %c0_45] : memref<8x2x18xf32, #tpu.memory_space<vmem>>, vector<1x2x18xf32>
    %160 = vector.shape_cast %159 : vector<1x2x18xf32> to vector<2x18xf32>
    %161 = vector.shape_cast %157 : vector<2x18xf32> to vector<1x2x18xf32>
    tpu.vector_store %arg7[%158, %c0_44, %c0_45], %161 {strides = array<i32>} : memref<8x2x18xf32, #tpu.memory_space<vmem>>, vector<1x2x18xf32>,
    %162 = vector.broadcast %cst : f32 to vector<2x18xf32>
    %163 = arith.select %8, %157, %162 : vector<2x18xi1>, vector<2x18xf32>
    %cst_46 = arith.constant dense<0xFF800000> : vector<2xf32>
    %164 = vector.multi_reduction <maximumf>, %163, %cst_46 [1] : vector<2x18xf32> to vector<2xf32>
    %165 = vector.shape_cast %164 : vector<2xf32> to vector<2x1xf32>
    %166 = vector.broadcast %cst : f32 to vector<2x18xf32>
    %167 = arith.select %8, %166, %157 : vector<2x18xi1>, vector<2x18xf32>
    %cst_47 = arith.constant dense<0xFF800000> : vector<2xf32>
    %168 = vector.multi_reduction <maximumf>, %167, %cst_47 [1] : vector<2x18xf32> to vector<2xf32>
    %169 = vector.shape_cast %168 : vector<2xf32> to vector<2x1xf32>
    %170 = vector.broadcast %165 : vector<2x1xf32> to vector<2x18xf32>
    %171 = arith.cmpf oge, %157, %170 : vector<2x18xf32>
    %172 = arith.andi %8, %171 : vector<2x18xi1>
    %173 = vector.broadcast %cst_16 : f32 to vector<2x18xf32>
    %174 = arith.select %172, %6, %173 : vector<2x18xi1>, vector<2x18xf32>
    %cst_48 = arith.constant dense<0x7F800000> : vector<2xf32>
    %175 = vector.multi_reduction <minimumf>, %174, %cst_48 [1] : vector<2x18xf32> to vector<2xf32>
    %176 = vector.shape_cast %175 : vector<2xf32> to vector<2x1xf32>
    %cst_49 = arith.constant dense<true> : vector<2x18xi1>
    %177 = arith.xori %8, %cst_49 : vector<2x18xi1>
    %178 = vector.broadcast %169 : vector<2x1xf32> to vector<2x18xf32>
    %179 = arith.cmpf oge, %157, %178 : vector<2x18xf32>
    %180 = arith.andi %177, %179 : vector<2x18xi1>
    %181 = vector.broadcast %cst_16 : f32 to vector<2x18xf32>
    %182 = arith.select %180, %6, %181 : vector<2x18xi1>, vector<2x18xf32>
    %cst_50 = arith.constant dense<0x7F800000> : vector<2xf32>
    %183 = vector.multi_reduction <minimumf>, %182, %cst_50 [1] : vector<2x18xf32> to vector<2xf32>
    %184 = vector.shape_cast %183 : vector<2xf32> to vector<2x1xf32>
    %185 = vector.broadcast %176 : vector<2x1xf32> to vector<2x18xf32>
    %186 = arith.cmpf oeq, %6, %185 : vector<2x18xf32>
    %187 = vector.broadcast %184 : vector<2x1xf32> to vector<2x18xf32>
    %188 = arith.cmpf oeq, %6, %187 : vector<2x18xf32>
    %189 = arith.ori %186, %188 : vector<2x18xi1>
    %190 = arith.extui %189 : vector<2x18xi1> to vector<2x18xi32>
    %191 = arith.sitofp %190 : vector<2x18xi32> to vector<2x18xf32>
    %c4_i32 = arith.constant 4 : i32
    %cst_51 = arith.constant dense<0.000000e+00> : vector<2x128xf32>
    %192 = tpu.matmul %191, %0, %cst_51 {dimension_numbers = #tpu.dot_dimension_numbers<[1], [0], [0], [1], [0, 0, 1, 1], [], []>} : vector<2x18xf32>, vector<18x128xf32>, vector<2x128xf32> -> vector<2x128xf32>
    %cst_52 = arith.constant dense<0.000000e+00> : vector<2x128xf32>
    %193 = tpu.matmul %154, %1, %cst_52 {dimension_numbers = #tpu.dot_dimension_numbers<[1], [0], [0], [1], [0, 0, 1, 1], [], []>} : vector<2x32xf32>, vector<32x128xf32>, vector<2x128xf32> -> vector<2x128xf32>
    %194 = arith.addf %192, %193 : vector<2x128xf32>
    %195 = vector.broadcast %2 : vector<1x128xf32> to vector<2x128xf32>
    %196 = arith.addf %194, %195 : vector<2x128xf32>
    %197 = arith.negf %196 : vector<2x128xf32>
    %198 = math.exp %197 : vector<2x128xf32>
    %cst_53 = arith.constant 1.000000e+00 : f32
    %199 = vector.broadcast %cst_53 : f32 to vector<2x128xf32>
    %200 = arith.addf %199, %198 : vector<2x128xf32>
    %201 = arith.divf %199, %200 : vector<2x128xf32>
    %202 = math.tanh %196 : vector<2x128xf32>
    %203 = vector.extract_strided_slice %201 {offsets = [0, 0], sizes = [2, 32], strides = [1, 1]} : vector<2x128xf32> to vector<2x32xf32>
    %204 = vector.extract_strided_slice %201 {offsets = [0, 32], sizes = [2, 32], strides = [1, 1]} : vector<2x128xf32> to vector<2x32xf32>
    %205 = vector.extract_strided_slice %202 {offsets = [0, 64], sizes = [2, 32], strides = [1, 1]} : vector<2x128xf32> to vector<2x32xf32>
    %206 = vector.extract_strided_slice %201 {offsets = [0, 96], sizes = [2, 32], strides = [1, 1]} : vector<2x128xf32> to vector<2x32xf32>
    %207 = arith.mulf %204, %152 : vector<2x32xf32>
    %208 = arith.mulf %203, %205 : vector<2x32xf32>
    %209 = arith.addf %207, %208 : vector<2x32xf32>
    %210 = math.tanh %209 : vector<2x32xf32>
    %211 = arith.mulf %206, %210 : vector<2x32xf32>
    %cst_54 = arith.constant dense<0.000000e+00> : vector<2x18xf32>
    %212 = tpu.matmul %211, %3, %cst_54 {dimension_numbers = #tpu.dot_dimension_numbers<[1], [0], [0], [1], [0, 0, 1, 1], [], []>} : vector<2x32xf32>, vector<32x18xf32>, vector<2x18xf32> -> vector<2x18xf32>
    %213 = vector.broadcast %4 : vector<1x18xf32> to vector<2x18xf32>
    %214 = arith.addf %212, %213 : vector<2x18xf32>
    %215 = arith.index_cast %c4_i32 : i32 to index
    %c0_55 = arith.constant 0 : index
    %c0_56 = arith.constant 0 : index
    %216 = vector.load %arg7[%215, %c0_55, %c0_56] : memref<8x2x18xf32, #tpu.memory_space<vmem>>, vector<1x2x18xf32>
    %217 = vector.shape_cast %216 : vector<1x2x18xf32> to vector<2x18xf32>
    %218 = vector.shape_cast %214 : vector<2x18xf32> to vector<1x2x18xf32>
    tpu.vector_store %arg7[%215, %c0_55, %c0_56], %218 {strides = array<i32>} : memref<8x2x18xf32, #tpu.memory_space<vmem>>, vector<1x2x18xf32>,
    %219 = vector.broadcast %cst : f32 to vector<2x18xf32>
    %220 = arith.select %8, %214, %219 : vector<2x18xi1>, vector<2x18xf32>
    %cst_57 = arith.constant dense<0xFF800000> : vector<2xf32>
    %221 = vector.multi_reduction <maximumf>, %220, %cst_57 [1] : vector<2x18xf32> to vector<2xf32>
    %222 = vector.shape_cast %221 : vector<2xf32> to vector<2x1xf32>
    %223 = vector.broadcast %cst : f32 to vector<2x18xf32>
    %224 = arith.select %8, %223, %214 : vector<2x18xi1>, vector<2x18xf32>
    %cst_58 = arith.constant dense<0xFF800000> : vector<2xf32>
    %225 = vector.multi_reduction <maximumf>, %224, %cst_58 [1] : vector<2x18xf32> to vector<2xf32>
    %226 = vector.shape_cast %225 : vector<2xf32> to vector<2x1xf32>
    %227 = vector.broadcast %222 : vector<2x1xf32> to vector<2x18xf32>
    %228 = arith.cmpf oge, %214, %227 : vector<2x18xf32>
    %229 = arith.andi %8, %228 : vector<2x18xi1>
    %230 = vector.broadcast %cst_16 : f32 to vector<2x18xf32>
    %231 = arith.select %229, %6, %230 : vector<2x18xi1>, vector<2x18xf32>
    %cst_59 = arith.constant dense<0x7F800000> : vector<2xf32>
    %232 = vector.multi_reduction <minimumf>, %231, %cst_59 [1] : vector<2x18xf32> to vector<2xf32>
    %233 = vector.shape_cast %232 : vector<2xf32> to vector<2x1xf32>
    %cst_60 = arith.constant dense<true> : vector<2x18xi1>
    %234 = arith.xori %8, %cst_60 : vector<2x18xi1>
    %235 = vector.broadcast %226 : vector<2x1xf32> to vector<2x18xf32>
    %236 = arith.cmpf oge, %214, %235 : vector<2x18xf32>
    %237 = arith.andi %234, %236 : vector<2x18xi1>
    %238 = vector.broadcast %cst_16 : f32 to vector<2x18xf32>
    %239 = arith.select %237, %6, %238 : vector<2x18xi1>, vector<2x18xf32>
    %cst_61 = arith.constant dense<0x7F800000> : vector<2xf32>
    %240 = vector.multi_reduction <minimumf>, %239, %cst_61 [1] : vector<2x18xf32> to vector<2xf32>
    %241 = vector.shape_cast %240 : vector<2xf32> to vector<2x1xf32>
    %242 = vector.broadcast %233 : vector<2x1xf32> to vector<2x18xf32>
    %243 = arith.cmpf oeq, %6, %242 : vector<2x18xf32>
    %244 = vector.broadcast %241 : vector<2x1xf32> to vector<2x18xf32>
    %245 = arith.cmpf oeq, %6, %244 : vector<2x18xf32>
    %246 = arith.ori %243, %245 : vector<2x18xi1>
    %247 = arith.extui %246 : vector<2x18xi1> to vector<2x18xi32>
    %248 = arith.sitofp %247 : vector<2x18xi32> to vector<2x18xf32>
    %c5_i32 = arith.constant 5 : i32
    %cst_62 = arith.constant dense<0.000000e+00> : vector<2x128xf32>
    %249 = tpu.matmul %248, %0, %cst_62 {dimension_numbers = #tpu.dot_dimension_numbers<[1], [0], [0], [1], [0, 0, 1, 1], [], []>} : vector<2x18xf32>, vector<18x128xf32>, vector<2x128xf32> -> vector<2x128xf32>
    %cst_63 = arith.constant dense<0.000000e+00> : vector<2x128xf32>
    %250 = tpu.matmul %211, %1, %cst_63 {dimension_numbers = #tpu.dot_dimension_numbers<[1], [0], [0], [1], [0, 0, 1, 1], [], []>} : vector<2x32xf32>, vector<32x128xf32>, vector<2x128xf32> -> vector<2x128xf32>
    %251 = arith.addf %249, %250 : vector<2x128xf32>
    %252 = vector.broadcast %2 : vector<1x128xf32> to vector<2x128xf32>
    %253 = arith.addf %251, %252 : vector<2x128xf32>
    %254 = arith.negf %253 : vector<2x128xf32>
    %255 = math.exp %254 : vector<2x128xf32>
    %cst_64 = arith.constant 1.000000e+00 : f32
    %256 = vector.broadcast %cst_64 : f32 to vector<2x128xf32>
    %257 = arith.addf %256, %255 : vector<2x128xf32>
    %258 = arith.divf %256, %257 : vector<2x128xf32>
    %259 = math.tanh %253 : vector<2x128xf32>
    %260 = vector.extract_strided_slice %258 {offsets = [0, 0], sizes = [2, 32], strides = [1, 1]} : vector<2x128xf32> to vector<2x32xf32>
    %261 = vector.extract_strided_slice %258 {offsets = [0, 32], sizes = [2, 32], strides = [1, 1]} : vector<2x128xf32> to vector<2x32xf32>
    %262 = vector.extract_strided_slice %259 {offsets = [0, 64], sizes = [2, 32], strides = [1, 1]} : vector<2x128xf32> to vector<2x32xf32>
    %263 = vector.extract_strided_slice %258 {offsets = [0, 96], sizes = [2, 32], strides = [1, 1]} : vector<2x128xf32> to vector<2x32xf32>
    %264 = arith.mulf %261, %209 : vector<2x32xf32>
    %265 = arith.mulf %260, %262 : vector<2x32xf32>
    %266 = arith.addf %264, %265 : vector<2x32xf32>
    %267 = math.tanh %266 : vector<2x32xf32>
    %268 = arith.mulf %263, %267 : vector<2x32xf32>
    %cst_65 = arith.constant dense<0.000000e+00> : vector<2x18xf32>
    %269 = tpu.matmul %268, %3, %cst_65 {dimension_numbers = #tpu.dot_dimension_numbers<[1], [0], [0], [1], [0, 0, 1, 1], [], []>} : vector<2x32xf32>, vector<32x18xf32>, vector<2x18xf32> -> vector<2x18xf32>
    %270 = vector.broadcast %4 : vector<1x18xf32> to vector<2x18xf32>
    %271 = arith.addf %269, %270 : vector<2x18xf32>
    %272 = arith.index_cast %c5_i32 : i32 to index
    %c0_66 = arith.constant 0 : index
    %c0_67 = arith.constant 0 : index
    %273 = vector.load %arg7[%272, %c0_66, %c0_67] : memref<8x2x18xf32, #tpu.memory_space<vmem>>, vector<1x2x18xf32>
    %274 = vector.shape_cast %273 : vector<1x2x18xf32> to vector<2x18xf32>
    %275 = vector.shape_cast %271 : vector<2x18xf32> to vector<1x2x18xf32>
    tpu.vector_store %arg7[%272, %c0_66, %c0_67], %275 {strides = array<i32>} : memref<8x2x18xf32, #tpu.memory_space<vmem>>, vector<1x2x18xf32>,
    %276 = vector.broadcast %cst : f32 to vector<2x18xf32>
    %277 = arith.select %8, %271, %276 : vector<2x18xi1>, vector<2x18xf32>
    %cst_68 = arith.constant dense<0xFF800000> : vector<2xf32>
    %278 = vector.multi_reduction <maximumf>, %277, %cst_68 [1] : vector<2x18xf32> to vector<2xf32>
    %279 = vector.shape_cast %278 : vector<2xf32> to vector<2x1xf32>
    %280 = vector.broadcast %cst : f32 to vector<2x18xf32>
    %281 = arith.select %8, %280, %271 : vector<2x18xi1>, vector<2x18xf32>
    %cst_69 = arith.constant dense<0xFF800000> : vector<2xf32>
    %282 = vector.multi_reduction <maximumf>, %281, %cst_69 [1] : vector<2x18xf32> to vector<2xf32>
    %283 = vector.shape_cast %282 : vector<2xf32> to vector<2x1xf32>
    %284 = vector.broadcast %279 : vector<2x1xf32> to vector<2x18xf32>
    %285 = arith.cmpf oge, %271, %284 : vector<2x18xf32>
    %286 = arith.andi %8, %285 : vector<2x18xi1>
    %287 = vector.broadcast %cst_16 : f32 to vector<2x18xf32>
    %288 = arith.select %286, %6, %287 : vector<2x18xi1>, vector<2x18xf32>
    %cst_70 = arith.constant dense<0x7F800000> : vector<2xf32>
    %289 = vector.multi_reduction <minimumf>, %288, %cst_70 [1] : vector<2x18xf32> to vector<2xf32>
    %290 = vector.shape_cast %289 : vector<2xf32> to vector<2x1xf32>
    %cst_71 = arith.constant dense<true> : vector<2x18xi1>
    %291 = arith.xori %8, %cst_71 : vector<2x18xi1>
    %292 = vector.broadcast %283 : vector<2x1xf32> to vector<2x18xf32>
    %293 = arith.cmpf oge, %271, %292 : vector<2x18xf32>
    %294 = arith.andi %291, %293 : vector<2x18xi1>
    %295 = vector.broadcast %cst_16 : f32 to vector<2x18xf32>
    %296 = arith.select %294, %6, %295 : vector<2x18xi1>, vector<2x18xf32>
    %cst_72 = arith.constant dense<0x7F800000> : vector<2xf32>
    %297 = vector.multi_reduction <minimumf>, %296, %cst_72 [1] : vector<2x18xf32> to vector<2xf32>
    %298 = vector.shape_cast %297 : vector<2xf32> to vector<2x1xf32>
    %299 = vector.broadcast %290 : vector<2x1xf32> to vector<2x18xf32>
    %300 = arith.cmpf oeq, %6, %299 : vector<2x18xf32>
    %301 = vector.broadcast %298 : vector<2x1xf32> to vector<2x18xf32>
    %302 = arith.cmpf oeq, %6, %301 : vector<2x18xf32>
    %303 = arith.ori %300, %302 : vector<2x18xi1>
    %304 = arith.extui %303 : vector<2x18xi1> to vector<2x18xi32>
    %305 = arith.sitofp %304 : vector<2x18xi32> to vector<2x18xf32>
    %c6_i32 = arith.constant 6 : i32
    %cst_73 = arith.constant dense<0.000000e+00> : vector<2x128xf32>
    %306 = tpu.matmul %305, %0, %cst_73 {dimension_numbers = #tpu.dot_dimension_numbers<[1], [0], [0], [1], [0, 0, 1, 1], [], []>} : vector<2x18xf32>, vector<18x128xf32>, vector<2x128xf32> -> vector<2x128xf32>
    %cst_74 = arith.constant dense<0.000000e+00> : vector<2x128xf32>
    %307 = tpu.matmul %268, %1, %cst_74 {dimension_numbers = #tpu.dot_dimension_numbers<[1], [0], [0], [1], [0, 0, 1, 1], [], []>} : vector<2x32xf32>, vector<32x128xf32>, vector<2x128xf32> -> vector<2x128xf32>
    %308 = arith.addf %306, %307 : vector<2x128xf32>
    %309 = vector.broadcast %2 : vector<1x128xf32> to vector<2x128xf32>
    %310 = arith.addf %308, %309 : vector<2x128xf32>
    %311 = arith.negf %310 : vector<2x128xf32>
    %312 = math.exp %311 : vector<2x128xf32>
    %cst_75 = arith.constant 1.000000e+00 : f32
    %313 = vector.broadcast %cst_75 : f32 to vector<2x128xf32>
    %314 = arith.addf %313, %312 : vector<2x128xf32>
    %315 = arith.divf %313, %314 : vector<2x128xf32>
    %316 = math.tanh %310 : vector<2x128xf32>
    %317 = vector.extract_strided_slice %315 {offsets = [0, 0], sizes = [2, 32], strides = [1, 1]} : vector<2x128xf32> to vector<2x32xf32>
    %318 = vector.extract_strided_slice %315 {offsets = [0, 32], sizes = [2, 32], strides = [1, 1]} : vector<2x128xf32> to vector<2x32xf32>
    %319 = vector.extract_strided_slice %316 {offsets = [0, 64], sizes = [2, 32], strides = [1, 1]} : vector<2x128xf32> to vector<2x32xf32>
    %320 = vector.extract_strided_slice %315 {offsets = [0, 96], sizes = [2, 32], strides = [1, 1]} : vector<2x128xf32> to vector<2x32xf32>
    %321 = arith.mulf %318, %266 : vector<2x32xf32>
    %322 = arith.mulf %317, %319 : vector<2x32xf32>
    %323 = arith.addf %321, %322 : vector<2x32xf32>
    %324 = math.tanh %323 : vector<2x32xf32>
    %325 = arith.mulf %320, %324 : vector<2x32xf32>
    %cst_76 = arith.constant dense<0.000000e+00> : vector<2x18xf32>
    %326 = tpu.matmul %325, %3, %cst_76 {dimension_numbers = #tpu.dot_dimension_numbers<[1], [0], [0], [1], [0, 0, 1, 1], [], []>} : vector<2x32xf32>, vector<32x18xf32>, vector<2x18xf32> -> vector<2x18xf32>
    %327 = vector.broadcast %4 : vector<1x18xf32> to vector<2x18xf32>
    %328 = arith.addf %326, %327 : vector<2x18xf32>
    %329 = arith.index_cast %c6_i32 : i32 to index
    %c0_77 = arith.constant 0 : index
    %c0_78 = arith.constant 0 : index
    %330 = vector.load %arg7[%329, %c0_77, %c0_78] : memref<8x2x18xf32, #tpu.memory_space<vmem>>, vector<1x2x18xf32>
    %331 = vector.shape_cast %330 : vector<1x2x18xf32> to vector<2x18xf32>
    %332 = vector.shape_cast %328 : vector<2x18xf32> to vector<1x2x18xf32>
    tpu.vector_store %arg7[%329, %c0_77, %c0_78], %332 {strides = array<i32>} : memref<8x2x18xf32, #tpu.memory_space<vmem>>, vector<1x2x18xf32>,
    %333 = vector.broadcast %cst : f32 to vector<2x18xf32>
    %334 = arith.select %8, %328, %333 : vector<2x18xi1>, vector<2x18xf32>
    %cst_79 = arith.constant dense<0xFF800000> : vector<2xf32>
    %335 = vector.multi_reduction <maximumf>, %334, %cst_79 [1] : vector<2x18xf32> to vector<2xf32>
    %336 = vector.shape_cast %335 : vector<2xf32> to vector<2x1xf32>
    %337 = vector.broadcast %cst : f32 to vector<2x18xf32>
    %338 = arith.select %8, %337, %328 : vector<2x18xi1>, vector<2x18xf32>
    %cst_80 = arith.constant dense<0xFF800000> : vector<2xf32>
    %339 = vector.multi_reduction <maximumf>, %338, %cst_80 [1] : vector<2x18xf32> to vector<2xf32>
    %340 = vector.shape_cast %339 : vector<2xf32> to vector<2x1xf32>
    %341 = vector.broadcast %336 : vector<2x1xf32> to vector<2x18xf32>
    %342 = arith.cmpf oge, %328, %341 : vector<2x18xf32>
    %343 = arith.andi %8, %342 : vector<2x18xi1>
    %344 = vector.broadcast %cst_16 : f32 to vector<2x18xf32>
    %345 = arith.select %343, %6, %344 : vector<2x18xi1>, vector<2x18xf32>
    %cst_81 = arith.constant dense<0x7F800000> : vector<2xf32>
    %346 = vector.multi_reduction <minimumf>, %345, %cst_81 [1] : vector<2x18xf32> to vector<2xf32>
    %347 = vector.shape_cast %346 : vector<2xf32> to vector<2x1xf32>
    %cst_82 = arith.constant dense<true> : vector<2x18xi1>
    %348 = arith.xori %8, %cst_82 : vector<2x18xi1>
    %349 = vector.broadcast %340 : vector<2x1xf32> to vector<2x18xf32>
    %350 = arith.cmpf oge, %328, %349 : vector<2x18xf32>
    %351 = arith.andi %348, %350 : vector<2x18xi1>
    %352 = vector.broadcast %cst_16 : f32 to vector<2x18xf32>
    %353 = arith.select %351, %6, %352 : vector<2x18xi1>, vector<2x18xf32>
    %cst_83 = arith.constant dense<0x7F800000> : vector<2xf32>
    %354 = vector.multi_reduction <minimumf>, %353, %cst_83 [1] : vector<2x18xf32> to vector<2xf32>
    %355 = vector.shape_cast %354 : vector<2xf32> to vector<2x1xf32>
    %356 = vector.broadcast %347 : vector<2x1xf32> to vector<2x18xf32>
    %357 = arith.cmpf oeq, %6, %356 : vector<2x18xf32>
    %358 = vector.broadcast %355 : vector<2x1xf32> to vector<2x18xf32>
    %359 = arith.cmpf oeq, %6, %358 : vector<2x18xf32>
    %360 = arith.ori %357, %359 : vector<2x18xi1>
    %361 = arith.extui %360 : vector<2x18xi1> to vector<2x18xi32>
    %362 = arith.sitofp %361 : vector<2x18xi32> to vector<2x18xf32>
    %c7_i32 = arith.constant 7 : i32
    %cst_84 = arith.constant dense<0.000000e+00> : vector<2x128xf32>
    %363 = tpu.matmul %362, %0, %cst_84 {dimension_numbers = #tpu.dot_dimension_numbers<[1], [0], [0], [1], [0, 0, 1, 1], [], []>} : vector<2x18xf32>, vector<18x128xf32>, vector<2x128xf32> -> vector<2x128xf32>
    %cst_85 = arith.constant dense<0.000000e+00> : vector<2x128xf32>
    %364 = tpu.matmul %325, %1, %cst_85 {dimension_numbers = #tpu.dot_dimension_numbers<[1], [0], [0], [1], [0, 0, 1, 1], [], []>} : vector<2x32xf32>, vector<32x128xf32>, vector<2x128xf32> -> vector<2x128xf32>
    %365 = arith.addf %363, %364 : vector<2x128xf32>
    %366 = vector.broadcast %2 : vector<1x128xf32> to vector<2x128xf32>
    %367 = arith.addf %365, %366 : vector<2x128xf32>
    %368 = arith.negf %367 : vector<2x128xf32>
    %369 = math.exp %368 : vector<2x128xf32>
    %cst_86 = arith.constant 1.000000e+00 : f32
    %370 = vector.broadcast %cst_86 : f32 to vector<2x128xf32>
    %371 = arith.addf %370, %369 : vector<2x128xf32>
    %372 = arith.divf %370, %371 : vector<2x128xf32>
    %373 = math.tanh %367 : vector<2x128xf32>
    %374 = vector.extract_strided_slice %372 {offsets = [0, 0], sizes = [2, 32], strides = [1, 1]} : vector<2x128xf32> to vector<2x32xf32>
    %375 = vector.extract_strided_slice %372 {offsets = [0, 32], sizes = [2, 32], strides = [1, 1]} : vector<2x128xf32> to vector<2x32xf32>
    %376 = vector.extract_strided_slice %373 {offsets = [0, 64], sizes = [2, 32], strides = [1, 1]} : vector<2x128xf32> to vector<2x32xf32>
    %377 = vector.extract_strided_slice %372 {offsets = [0, 96], sizes = [2, 32], strides = [1, 1]} : vector<2x128xf32> to vector<2x32xf32>
    %378 = arith.mulf %375, %323 : vector<2x32xf32>
    %379 = arith.mulf %374, %376 : vector<2x32xf32>
    %380 = arith.addf %378, %379 : vector<2x32xf32>
    %381 = math.tanh %380 : vector<2x32xf32>
    %382 = arith.mulf %377, %381 : vector<2x32xf32>
    %cst_87 = arith.constant dense<0.000000e+00> : vector<2x18xf32>
    %383 = tpu.matmul %382, %3, %cst_87 {dimension_numbers = #tpu.dot_dimension_numbers<[1], [0], [0], [1], [0, 0, 1, 1], [], []>} : vector<2x32xf32>, vector<32x18xf32>, vector<2x18xf32> -> vector<2x18xf32>
    %384 = vector.broadcast %4 : vector<1x18xf32> to vector<2x18xf32>
    %385 = arith.addf %383, %384 : vector<2x18xf32>
    %386 = arith.index_cast %c7_i32 : i32 to index
    %c0_88 = arith.constant 0 : index
    %c0_89 = arith.constant 0 : index
    %387 = vector.load %arg7[%386, %c0_88, %c0_89] : memref<8x2x18xf32, #tpu.memory_space<vmem>>, vector<1x2x18xf32>
    %388 = vector.shape_cast %387 : vector<1x2x18xf32> to vector<2x18xf32>
    %389 = vector.shape_cast %385 : vector<2x18xf32> to vector<1x2x18xf32>
    tpu.vector_store %arg7[%386, %c0_88, %c0_89], %389 {strides = array<i32>} : memref<8x2x18xf32, #tpu.memory_space<vmem>>, vector<1x2x18xf32>,
    %390 = vector.broadcast %cst : f32 to vector<2x18xf32>
    %391 = arith.select %8, %385, %390 : vector<2x18xi1>, vector<2x18xf32>
    %cst_90 = arith.constant dense<0xFF800000> : vector<2xf32>
    %392 = vector.multi_reduction <maximumf>, %391, %cst_90 [1] : vector<2x18xf32> to vector<2xf32>
    %393 = vector.shape_cast %392 : vector<2xf32> to vector<2x1xf32>
    %394 = vector.broadcast %cst : f32 to vector<2x18xf32>
    %395 = arith.select %8, %394, %385 : vector<2x18xi1>, vector<2x18xf32>
    %cst_91 = arith.constant dense<0xFF800000> : vector<2xf32>
    %396 = vector.multi_reduction <maximumf>, %395, %cst_91 [1] : vector<2x18xf32> to vector<2xf32>
    %397 = vector.shape_cast %396 : vector<2xf32> to vector<2x1xf32>
    %398 = vector.broadcast %393 : vector<2x1xf32> to vector<2x18xf32>
    %399 = arith.cmpf oge, %385, %398 : vector<2x18xf32>
    %400 = arith.andi %8, %399 : vector<2x18xi1>
    %401 = vector.broadcast %cst_16 : f32 to vector<2x18xf32>
    %402 = arith.select %400, %6, %401 : vector<2x18xi1>, vector<2x18xf32>
    %cst_92 = arith.constant dense<0x7F800000> : vector<2xf32>
    %403 = vector.multi_reduction <minimumf>, %402, %cst_92 [1] : vector<2x18xf32> to vector<2xf32>
    %404 = vector.shape_cast %403 : vector<2xf32> to vector<2x1xf32>
    %cst_93 = arith.constant dense<true> : vector<2x18xi1>
    %405 = arith.xori %8, %cst_93 : vector<2x18xi1>
    %406 = vector.broadcast %397 : vector<2x1xf32> to vector<2x18xf32>
    %407 = arith.cmpf oge, %385, %406 : vector<2x18xf32>
    %408 = arith.andi %405, %407 : vector<2x18xi1>
    %409 = vector.broadcast %cst_16 : f32 to vector<2x18xf32>
    %410 = arith.select %408, %6, %409 : vector<2x18xi1>, vector<2x18xf32>
    %cst_94 = arith.constant dense<0x7F800000> : vector<2xf32>
    %411 = vector.multi_reduction <minimumf>, %410, %cst_94 [1] : vector<2x18xf32> to vector<2xf32>
    %412 = vector.shape_cast %411 : vector<2xf32> to vector<2x1xf32>
    %413 = vector.broadcast %404 : vector<2x1xf32> to vector<2x18xf32>
    %414 = arith.cmpf oeq, %6, %413 : vector<2x18xf32>
    %415 = vector.broadcast %412 : vector<2x1xf32> to vector<2x18xf32>
    %416 = arith.cmpf oeq, %6, %415 : vector<2x18xf32>
    %417 = arith.ori %414, %416 : vector<2x18xi1>
    %418 = arith.extui %417 : vector<2x18xi1> to vector<2x18xi32>
    %419 = arith.sitofp %418 : vector<2x18xi32> to vector<2x18xf32>
    %c7_i32_95 = arith.constant 7 : i32
    return
  }
}

</mosaic_0001>

<bundles_post_ra>
// kernel: decoder_forward.1
= control target key start
LH: loop header
LB: loop body
LE: loop exit
PB: predicated region body
PF: predicated region fallthrough
CT: control target
= control target key end

     0   :  { %v2480_v0 = vmov 0.0|0.0   ;;  %v39_v4 = vlaneseq  ;;  %vm2481_vm0 = vmmov 0   ;;  %v2482_v9 = vmov 0.0   ;;  %s2483_s18 = smov 64   ;;  %s2484_s21 = smov 32   ;;  %s2957_s1 = inlined_call_operand.vmem [shape: f32[32,128], index: 1, kind: input, shape index: {}]   ;;  %s2958_s0 = inlined_call_operand.vmem [shape: f32[18,128], index: 0, kind: input, shape index: {}]   ;;  %s2959_s5 = inlined_call_operand.vmem [shape: f32[2,32], index: 5, kind: input, shape index: {}]   ;;  %s2960_s7 = inlined_call_operand.vmem [shape: f32[8,2,18], index: 7, kind: output, shape index: {}]   ;;  %s2961_s2 = inlined_call_operand.vmem [shape: f32[1,128], index: 2, kind: input, shape index: {}]   ;;  %s2962_s6 = inlined_call_operand.vmem [shape: f32[2,32], index: 6, kind: input, shape index: {}]   ;;  %s2963_s3 = inlined_call_operand.vmem [shape: f32[32,18], index: 3, kind: input, shape index: {}]   ;;  %s2964_s4 = inlined_call_operand.vmem [shape: f32[1,18], index: 4, kind: input, shape index: {}]  }
   0x1   :  { %2313 = vmatprep.subr.bf16.mxu0 %v2480_v0  ;;  %v29_v1 = vld [vmem:[%s2957_s1] sm:$0xff]  ;;  %v30_v2 = vld [vmem:[%s2957_s1 + $0x8] sm:$0xff]  ;;  %2319 = vmatprep.subr.bf16.mxu1 %v2480_v0  ;;  %v31_v7 = vld [vmem:[%s2957_s1 + $0x10] sm:$0xff]  ;;  %vm130_vm3 = vcmask 1041408   ;;  %vm48_vm5 = vcmask 140288   ;;  %vm126_vm6 = vcmask 146432  }
   0x2   :  { %v26_v3 = vld [vmem:[%s2958_s0] sm:$0xff]  ;;  %v2537_v5 = vpack.c.bf16 %v30_v2, %v29_v1  ;;  %v27_v6 = vld [vmem:[%s2958_s0 + $0x8] sm:$0xff]  ;;  %v32_v8 = vld [vmem:[%s2957_s1 + $0x18] sm:$0xff]  ;;  %2113 = vmatprep.mubr.msk.f32.mxu1 %vm2481_vm0, %v2482_v9  ;;  %2104 = vmatprep.mubr.msk.f32.mxu0 %vm2481_vm0, %v2482_v9  ;;  %v2554_v11 = vand.u32 127, %v39_v4  ;;  %vm52_vm7 = vcmask 261120   ;;  %vm2485_vm9 = vmmov 1  }
   0x3   :  { %v2552_v10 = vpack.c.bf16 %v27_v6, %v26_v3  ;;  %v2557_v12 = vpack.c.bf16 %v32_v8, %v31_v7  ;;  %v2567_v13 = vld [vmem:[%s2958_s0 + $0x10] sm:$0x3]  ;;  %v50_v15 = vld [vmem:[%s2959_s5] sm:$0x3]  ;;  %v35_v36 = vld [vmem:[%s2963_s3 + $0x8] sm:$0xff] }
   0x4   :  { %2315 = vmatpush3.bf16.msra.mxu0 %v2537_v5  ;;  %vm43_vm1 = vcmp.eq.s32.totalorder %v2554_v11, 1  ;;  %vm44_vm2 = vcmp.eq.s32.totalorder %v2554_v11, 9  ;;  %v2595_v17 = vld [vmem:[%s2961_s2] ss:$0 sm:$0xff]  ;;  %v36_v37 = vld [vmem:[%s2963_s3 + $0x10] sm:$0xff]  ;;  %v37_v39 = vld [vmem:[%s2963_s3 + $0x18] sm:$0xff]  ;;  %v2662_v55 = vcvt.s32.f32 %v2554_v11 }
   0x5   :  { %2321 = vmatpush3.bf16.msra.mxu1 %v2552_v10  ;;  %2316 = vmatprep.subr.bf16.mxu0 %v2480_v0  ;;  %vm45_vm4 = vmor %vm43_vm1, %vm44_vm2  ;;  %v51_v24 = vld [vmem:[%s2962_s6] sm:$0x3]  ;;  %v2622_v40 = vpack.c.bf16 %v37_v39, %v36_v37  ;;  %vm42_vm8 = vcmp.lt.s32.totalorder %v2554_v11, 8 }
   0x6   :  { %2111 = vmatprep.subr.mxu1 %v2482_v9  ;;  %v1947_v14 = vsel %vm45_vm4, 1.0, %v2482_v9  ;;  %v34_v35 = vld [vmem:[%s2963_s3] sm:$0xff]  ;;  %vm2666_vm10 = vmxor %vm42_vm8, %vm2485_vm9 }
   0x7   :  { %49 = vst.msk [vmem:[%s2960_s7] sm:$0x3] %vm48_vm5, %v1947_v14  ;;  %v2616_v38 = vpack.c.bf16 %v35_v36, %v34_v35  ;;  %v2647_v45 = vld [vmem:[%s2964_s4] ss:$0 sm:$0xff] }
   0x8   :  { %2318 = vmatpush3.bf16.msra.mxu0 %v2557_v12 }
   0x9   :  { %2112 = vmatpush3.msk.msra.mxu1 %vm130_vm3, %v2567_v13  ;;  %2328 = vmatprep.subr.bf16.mxu0 %v2480_v0 }
   0xa   :  { %2114 = vmatmul.mubr.msk.f32.vlgmr.msra.gmra.mrb[0].mxu1 %vm126_vm6, %v1947_v14  ;;  %2322 = vmatprep.subr.bf16.mxu1 %v2480_v0 }
   0xb   :  { %2105 = vmatmul.mubr.msk.f32.vlgmr.msra.gmra.mrb[0].mxu0 %vm52_vm7, %v50_v15  ;;  %2124 = vmatprep.mubr.msk.f32.mxu1 %vm2481_vm0, %v2482_v9 }
   0xc   :  { %2330 = vmatpush3.bf16.msra.mxu0 %v2537_v5  ;;  %2135 = vmatprep.mubr.msk.f32.mxu0 %vm2481_vm0, %v2482_v9 }
   0xd   :  { %2331 = vmatprep.subr.bf16.mxu0 %v2480_v0  ;;  %2324 = vmatpush3.bf16.msra.mxu1 %v2616_v38 }
   0xe   :  { %2325 = vmatprep.subr.bf16.mxu1 %v2480_v0 }
  0x10   :  { %2333 = vmatpush3.bf16.msra.mxu0 %v2557_v12 }
  0x11   :  { %2337 = vmatprep.subr.bf16.mxu0 %v2480_v0  ;;  %2327 = vmatpush3.bf16.msra.mxu1 %v2622_v40 }
  0x12   :  { %2334 = vmatprep.subr.bf16.mxu1 %v2480_v0 }
  0xdd   :  { %v200_v16 = vpop.f32.mrb[0].mxu1 }
  0xde   :  { %v122_v18 = vpop.f32.mrb[0].mxu0  ;;  %v2115_v19 = vpop.f32.mrb[1].mxu1 }
  0xdf   :  { %v201_v20 = vadd.f32 %v200_v16, %v122_v18  ;;  %v2106_v21 = vpop.f32.mrb[1].mxu0 }
  0xe1   :  { %v210_v22 = vadd.f32 %v2595_v17, %v201_v20 }
  0xe3   :  { %2424 = vtanh.f32 %v210_v22  ;;  %v1952_v25 = vmul.f32 -1.442695, %v210_v22 }
  0xe5   :  { %2426 = vpow2.f32 %v1952_v25 }
  0xed   :  { %v2425_v23 = vpop.eup %2424 }
  0xee   :  { %224 = vrot.lane.b32.xlu0 %v2425_v23, %s2483_s18 }
  0xef   :  { %v2427_v26 = vpop.eup %2426 }
  0xf0   :  { %v214_v27 = vadd.f32 1.0, %v2427_v26 }
  0xf2   :  { %219 = vrot.lane.b32.xlu0 %v51_v24, %s2484_s21  ;;  %2428 = vrcp.f32 %v214_v27 }
  0xfc   :  { %v2429_v28 = vpop.eup %2428 }
 0x160   :  { %v225_v29 = vpop.permute.xlu0 %224 }
 0x161   :  { %v227_v30 = vmul.f32 %v2429_v28, %v225_v29 }
 0x163   :  { %229 = vrot.lane.b32.xlu1 %v227_v30, %s2484_s21 }
 0x164   :  { %v220_v31 = vpop.permute.xlu0 %219 }
 0x165   :  { %v222_v32 = vmul.f32 %v2429_v28, %v220_v31 }
 0x1d5   :  { %v230_v33 = vpop.permute.xlu1 %229 }
 0x1d6   :  { %v2604_v34 = vadd.f32 %v230_v33, %v222_v32 }
 0x1d8   :  { %2430 = vtanh.f32 %v2604_v34 }
 0x1e2   :  { %v2431_v41 = vpop.eup %2430 }
 0x1e3   :  { %235 = vrot.lane.b32.xlu1 %v2431_v41, %s2483_s18 }
 0x255   :  { %v236_v42 = vpop.permute.xlu1 %235 }
 0x256   :  { %v238_v43 = vmul.f32 %v2429_v28, %v236_v42 }
 0x258   :  { %246 = vrot.lane.b32.xlu0 %v238_v43, %s2484_s21 }
 0x2ca   :  { %v247_v44 = vpop.permute.xlu0 %246 }
 0x2cb   :  { %2125 = vmatmul.mubr.msk.f32.vlgmr.msra.gmra.mrb[2].mxu1 %vm52_vm7, %v247_v44  ;;  %2136 = vmatmul.mubr.msk.f32.vlgmr.msra.gmra.mrb[2].mxu0 %vm52_vm7, %v247_v44 }
 0x2cc   :  { %2336 = vmatpush3.bf16.msra.mxu1 %v2552_v10  ;;  %2144 = vmatprep.mubr.msk.f32.mxu1 %vm2481_vm0, %v2482_v9 }
 0x2cd   :  { %2142 = vmatprep.subr.mxu1 %v2482_v9  ;;  %2339 = vmatpush3.bf16.msra.mxu0 %v2616_v38 }
 0x2ce   :  { %2340 = vmatprep.subr.bf16.mxu0 %v2480_v0  ;;  %2155 = vmatprep.mubr.msk.f32.mxu0 %vm2481_vm0, %v2482_v9 }
 0x2d0   :  { %2143 = vmatpush3.msk.msra.mxu1 %vm130_vm3, %v2567_v13 }
 0x2d1   :  { %2343 = vmatprep.subr.bf16.mxu1 %v2480_v0  ;;  %2342 = vmatpush3.bf16.msra.mxu0 %v2622_v40 }
 0x2d2   :  { %2349 = vmatprep.subr.bf16.mxu0 %v2480_v0 }
 0x39e   :  { %v316_v46 = vpop.f32.mrb[2].mxu1  ;;  %v414_v47 = vpop.f32.mrb[2].mxu0 }
 0x39f   :  { %v317_v48 = vadd.f32 %v2647_v45, %v316_v46  ;;  %v2126_v49 = vpop.f32.mrb[3].mxu1  ;;  %v2137_v50 = vpop.f32.mrb[3].mxu0 }
 0x3a1   :  { %1955 = vst.msk [vmem:[%s2960_s7 + $0x2] sm:$0x3] %vm48_vm5, %v317_v48  ;;  %v326_v51 = vsel %vm42_vm8, -1e+30, %v317_v48  ;;  %v322_v52 = vsel %vm42_vm8, %v317_v48, -1e+30 }
 0x3a2   :  { %v327_v53 = vsel %vm48_vm5, %v326_v51, -inf  ;;  %v323_v54 = vsel %vm48_vm5, %v322_v52, -inf }
 0x3a3   :  { %328 = vmax.xlane.f32.xlu0 %v327_v53  ;;  %324 = vmax.xlane.f32.xlu1 %v323_v54 }
 0x430   :  { %v329_v57 = vpop.xlane.xlu0 %328  ;;  %v325_v58 = vpop.xlane.xlu1 %324 }
 0x431   :  { %vm337_vm11 = vcmp.ge.f32.partialorder %v317_v48, %v329_v57  ;;  %vm330_vm12 = vcmp.ge.f32.partialorder %v317_v48, %v325_v58 }
 0x432   :  { %vm338_vm13 = vmand %vm2666_vm10, %vm337_vm11 }
 0x433   :  { %vm331_vm14 = vmand %vm42_vm8, %vm330_vm12  ;;  %v339_v59 = vsel %vm338_vm13, %v2662_v55, 18.0 }
 0x434   :  { %v340_v60 = vsel %vm48_vm5, %v339_v59, inf  ;;  %v332_v61 = vsel %vm331_vm14, %v2662_v55, 18.0 }
 0x435   :  { %341 = vmin.xlane.f32.xlu1 %v340_v60  ;;  %v333_v62 = vsel %vm48_vm5, %v332_v61, inf }
 0x436   :  { %334 = vmin.xlane.f32.xlu0 %v333_v62 }
 0x4c2   :  { %v342_v63 = vpop.xlane.xlu1 %341 }
 0x4c3   :  { %v335_v1 = vpop.xlane.xlu0 %334  ;;  %vm344_vm15 = vcmp.eq.f32.partialorder %v2662_v55, %v342_v63 }
 0x4c4   :  { %vm343_vm1 = vcmp.eq.f32.partialorder %v2662_v55, %v335_v1 }
 0x4c5   :  { %vm345_vm2 = vmor %vm343_vm1, %vm344_vm15 }
 0x4c6   :  { %v1956_v2 = vsel %vm345_vm2, 1.0, %v2482_v9 }
 0x4c7   :  { %2145 = vmatmul.mubr.msk.f32.vlgmr.msra.gmra.mrb[4].mxu1 %vm126_vm6, %v1956_v2 }
 0x4c8   :  { %2345 = vmatpush3.bf16.msra.mxu1 %v2537_v5  ;;  %2166 = vmatprep.mubr.msk.f32.mxu1 %vm2481_vm0, %v2482_v9 }
 0x4c9   :  { %2346 = vmatprep.subr.bf16.mxu1 %v2480_v0 }
 0x4cc   :  { %2348 = vmatpush3.bf16.msra.mxu1 %v2557_v12 }
 0x4cd   :  { %2352 = vmatprep.subr.bf16.mxu1 %v2480_v0 }
 0x59a   :  { %v487_v3 = vpop.f32.mrb[4].mxu1 }
 0x59b   :  { %v488_v4 = vadd.f32 %v487_v3, %v414_v47  ;;  %v2146_v6 = vpop.f32.mrb[5].mxu1 }
 0x59d   :  { %v491_v7 = vadd.f32 %v2595_v17, %v488_v4 }
 0x59f   :  { %2432 = vtanh.f32 %v491_v7  ;;  %v1960_v14 = vmul.f32 -1.442695, %v491_v7 }
 0x5a1   :  { %2434 = vpow2.f32 %v1960_v14 }
 0x5a9   :  { %v2433_v8 = vpop.eup %2432 }
 0x5aa   :  { %501 = vrot.lane.b32.xlu0 %v2433_v8, %s2483_s18 }
 0x5ab   :  { %v2435_v15 = vpop.eup %2434 }
 0x5ac   :  { %v495_v16 = vadd.f32 1.0, %v2435_v15 }
 0x5ae   :  { %2436 = vrcp.f32 %v495_v16 }
 0x5b8   :  { %v2437_v18 = vpop.eup %2436 }
 0x5b9   :  { %v499_v21 = vmul.f32 %v2437_v18, %v2604_v34 }
 0x61c   :  { %v502_v19 = vpop.permute.xlu0 %501 }
 0x61d   :  { %v504_v20 = vmul.f32 %v2437_v18, %v502_v19 }
 0x61f   :  { %506 = vrot.lane.b32.xlu1 %v504_v20, %s2484_s21 }
 0x691   :  { %v507_v22 = vpop.permute.xlu1 %506 }
 0x692   :  { %v2692_v23 = vadd.f32 %v507_v22, %v499_v21 }
 0x694   :  { %2438 = vtanh.f32 %v2692_v23 }
 0x69e   :  { %v2439_v24 = vpop.eup %2438 }
 0x69f   :  { %512 = vrot.lane.b32.xlu1 %v2439_v24, %s2483_s18 }
 0x711   :  { %v513_v25 = vpop.permute.xlu1 %512 }
 0x712   :  { %v515_v26 = vmul.f32 %v2437_v18, %v513_v25 }
 0x714   :  { %517 = vrot.lane.b32.xlu0 %v515_v26, %s2484_s21 }
 0x786   :  { %v518_v27 = vpop.permute.xlu0 %517 }
 0x787   :  { %2156 = vmatmul.mubr.msk.f32.vlgmr.msra.gmra.mrb[4].mxu0 %vm52_vm7, %v518_v27  ;;  %2167 = vmatmul.mubr.msk.f32.vlgmr.msra.gmra.mrb[6].mxu1 %vm52_vm7, %v518_v27 }
 0x788   :  { %2351 = vmatpush3.bf16.msra.mxu0 %v2552_v10  ;;  %2175 = vmatprep.mubr.msk.f32.mxu0 %vm2481_vm0, %v2482_v9 }
 0x789   :  { %2173 = vmatprep.subr.mxu0 %v2482_v9  ;;  %2354 = vmatpush3.bf16.msra.mxu1 %v2616_v38 }
 0x78a   :  { %2355 = vmatprep.subr.bf16.mxu1 %v2480_v0  ;;  %2186 = vmatprep.mubr.msk.f32.mxu1 %vm2481_vm0, %v2482_v9 }
 0x78c   :  { %2174 = vmatpush3.msk.msra.mxu0 %vm130_vm3, %v2567_v13 }
 0x78d   :  { %2358 = vmatprep.subr.bf16.mxu0 %v2480_v0  ;;  %2357 = vmatpush3.bf16.msra.mxu1 %v2622_v40 }
 0x78e   :  { %2364 = vmatprep.subr.bf16.mxu1 %v2480_v0 }
 0x85a   :  { %v587_v28 = vpop.f32.mrb[4].mxu0  ;;  %v684_v29 = vpop.f32.mrb[6].mxu1 }
 0x85b   :  { %v588_v30 = vadd.f32 %v2647_v45, %v587_v28  ;;  %v2157_v31 = vpop.f32.mrb[5].mxu0  ;;  %v2168_v32 = vpop.f32.mrb[7].mxu1 }
 0x85d   :  { %1962 = vst.msk [vmem:[%s2960_s7 + $0x4] sm:$0x3] %vm48_vm5, %v588_v30  ;;  %v597_v33 = vsel %vm42_vm8, -1e+30, %v588_v30  ;;  %v593_v34 = vsel %vm42_vm8, %v588_v30, -1e+30 }
 0x85e   :  { %v598_v35 = vsel %vm48_vm5, %v597_v33, -inf  ;;  %v594_v36 = vsel %vm48_vm5, %v593_v34, -inf }
 0x85f   :  { %599 = vmax.xlane.f32.xlu0 %v598_v35  ;;  %595 = vmax.xlane.f32.xlu1 %v594_v36 }
 0x8ec   :  { %v600_v37 = vpop.xlane.xlu0 %599  ;;  %v596_v39 = vpop.xlane.xlu1 %595 }
 0x8ed   :  { %vm607_vm4 = vcmp.ge.f32.partialorder %v588_v30, %v600_v37  ;;  %vm601_vm9 = vcmp.ge.f32.partialorder %v588_v30, %v596_v39 }
 0x8ee   :  { %vm608_vm11 = vmand %vm2666_vm10, %vm607_vm4 }
 0x8ef   :  { %vm602_vm12 = vmand %vm42_vm8, %vm601_vm9  ;;  %v609_v41 = vsel %vm608_vm11, %v2662_v55, 18.0 }
 0x8f0   :  { %v610_v42 = vsel %vm48_vm5, %v609_v41, inf  ;;  %v603_v43 = vsel %vm602_vm12, %v2662_v55, 18.0 }
 0x8f1   :  { %611 = vmin.xlane.f32.xlu1 %v610_v42  ;;  %v604_v44 = vsel %vm48_vm5, %v603_v43, inf }
 0x8f2   :  { %605 = vmin.xlane.f32.xlu0 %v604_v44 }
 0x97e   :  { %v612_v46 = vpop.xlane.xlu1 %611 }
 0x97f   :  { %v606_v47 = vpop.xlane.xlu0 %605  ;;  %vm614_vm13 = vcmp.eq.f32.partialorder %v2662_v55, %v612_v46 }
 0x980   :  { %vm613_vm14 = vcmp.eq.f32.partialorder %v2662_v55, %v606_v47 }
 0x981   :  { %vm615_vm15 = vmor %vm613_vm14, %vm614_vm13 }
 0x982   :  { %v1963_v48 = vsel %vm615_vm15, 1.0, %v2482_v9 }
 0x983   :  { %2176 = vmatmul.mubr.msk.f32.vlgmr.msra.gmra.mrb[6].mxu0 %vm126_vm6, %v1963_v48 }
 0x984   :  { %2360 = vmatpush3.bf16.msra.mxu0 %v2537_v5  ;;  %2197 = vmatprep.mubr.msk.f32.mxu0 %vm2481_vm0, %v2482_v9 }
 0x985   :  { %2361 = vmatprep.subr.bf16.mxu0 %v2480_v0 }
 0x988   :  { %2363 = vmatpush3.bf16.msra.mxu0 %v2557_v12 }
 0x989   :  { %2367 = vmatprep.subr.bf16.mxu0 %v2480_v0 }
 0xa56   :  { %v757_v49 = vpop.f32.mrb[6].mxu0 }
 0xa57   :  { %v758_v50 = vadd.f32 %v757_v49, %v684_v29  ;;  %v2177_v51 = vpop.f32.mrb[7].mxu0 }
 0xa59   :  { %v761_v52 = vadd.f32 %v2595_v17, %v758_v50 }
 0xa5b   :  { %2440 = vtanh.f32 %v761_v52  ;;  %v1967_v54 = vmul.f32 -1.442695, %v761_v52 }
 0xa5d   :  { %2442 = vpow2.f32 %v1967_v54 }
 0xa65   :  { %v2441_v53 = vpop.eup %2440 }
 0xa66   :  { %771 = vrot.lane.b32.xlu0 %v2441_v53, %s2483_s18 }
 0xa67   :  { %v2443_v57 = vpop.eup %2442 }
 0xa68   :  { %v765_v58 = vadd.f32 1.0, %v2443_v57 }
 0xa6a   :  { %2444 = vrcp.f32 %v765_v58 }
 0xa74   :  { %v2445_v59 = vpop.eup %2444 }
 0xa75   :  { %v769_v62 = vmul.f32 %v2445_v59, %v2692_v23 }
 0xad8   :  { %v772_v60 = vpop.permute.xlu0 %771 }
 0xad9   :  { %v774_v61 = vmul.f32 %v2445_v59, %v772_v60 }
 0xadb   :  { %776 = vrot.lane.b32.xlu1 %v774_v61, %s2484_s21 }
 0xb4d   :  { %v777_v63 = vpop.permute.xlu1 %776 }
 0xb4e   :  { %v2745_v1 = vadd.f32 %v777_v63, %v769_v62 }
 0xb50   :  { %2446 = vtanh.f32 %v2745_v1 }
 0xb5a   :  { %v2447_v2 = vpop.eup %2446 }
 0xb5b   :  { %782 = vrot.lane.b32.xlu1 %v2447_v2, %s2483_s18 }
 0xbcd   :  { %v783_v3 = vpop.permute.xlu1 %782 }
 0xbce   :  { %v785_v4 = vmul.f32 %v2445_v59, %v783_v3 }
 0xbd0   :  { %787 = vrot.lane.b32.xlu0 %v785_v4, %s2484_s21 }
 0xc42   :  { %v788_v6 = vpop.permute.xlu0 %787 }
 0xc43   :  { %2187 = vmatmul.mubr.msk.f32.vlgmr.msra.gmra.mrb[8].mxu1 %vm52_vm7, %v788_v6  ;;  %2198 = vmatmul.mubr.msk.f32.vlgmr.msra.gmra.mrb[8].mxu0 %vm52_vm7, %v788_v6 }
 0xc44   :  { %2366 = vmatpush3.bf16.msra.mxu1 %v2552_v10  ;;  %2206 = vmatprep.mubr.msk.f32.mxu1 %vm2481_vm0, %v2482_v9 }
 0xc45   :  { %2204 = vmatprep.subr.mxu1 %v2482_v9  ;;  %2369 = vmatpush3.bf16.msra.mxu0 %v2616_v38 }
 0xc46   :  { %2370 = vmatprep.subr.bf16.mxu0 %v2480_v0  ;;  %2217 = vmatprep.mubr.msk.f32.mxu0 %vm2481_vm0, %v2482_v9 }
 0xc48   :  { %2205 = vmatpush3.msk.msra.mxu1 %vm130_vm3, %v2567_v13 }
 0xc49   :  { %2373 = vmatprep.subr.bf16.mxu1 %v2480_v0  ;;  %2372 = vmatpush3.bf16.msra.mxu0 %v2622_v40 }
 0xc4a   :  { %2379 = vmatprep.subr.bf16.mxu0 %v2480_v0 }
 0xd16   :  { %v857_v7 = vpop.f32.mrb[8].mxu1  ;;  %v954_v8 = vpop.f32.mrb[8].mxu0 }
 0xd17   :  { %v858_v14 = vadd.f32 %v2647_v45, %v857_v7  ;;  %v2188_v15 = vpop.f32.mrb[9].mxu1  ;;  %v2199_v16 = vpop.f32.mrb[9].mxu0 }
 0xd19   :  { %1969 = vst.msk [vmem:[%s2960_s7 + $0x6] sm:$0x3] %vm48_vm5, %v858_v14  ;;  %v867_v18 = vsel %vm42_vm8, -1e+30, %v858_v14  ;;  %v863_v19 = vsel %vm42_vm8, %v858_v14, -1e+30 }
 0xd1a   :  { %v868_v20 = vsel %vm48_vm5, %v867_v18, -inf  ;;  %v864_v21 = vsel %vm48_vm5, %v863_v19, -inf }
 0xd1b   :  { %869 = vmax.xlane.f32.xlu0 %v868_v20  ;;  %865 = vmax.xlane.f32.xlu1 %v864_v21 }
 0xda8   :  { %v870_v22 = vpop.xlane.xlu0 %869  ;;  %v866_v23 = vpop.xlane.xlu1 %865 }
 0xda9   :  { %vm877_vm1 = vcmp.ge.f32.partialorder %v858_v14, %v870_v22  ;;  %vm871_vm2 = vcmp.ge.f32.partialorder %v858_v14, %v866_v23 }
 0xdaa   :  { %vm878_vm4 = vmand %vm2666_vm10, %vm877_vm1 }
 0xdab   :  { %vm872_vm9 = vmand %vm42_vm8, %vm871_vm2  ;;  %v879_v24 = vsel %vm878_vm4, %v2662_v55, 18.0 }
 0xdac   :  { %v880_v25 = vsel %vm48_vm5, %v879_v24, inf  ;;  %v873_v26 = vsel %vm872_vm9, %v2662_v55, 18.0 }
 0xdad   :  { %881 = vmin.xlane.f32.xlu1 %v880_v25  ;;  %v874_v27 = vsel %vm48_vm5, %v873_v26, inf }
 0xdae   :  { %875 = vmin.xlane.f32.xlu0 %v874_v27 }
 0xe3a   :  { %v882_v28 = vpop.xlane.xlu1 %881 }
 0xe3b   :  { %v876_v29 = vpop.xlane.xlu0 %875  ;;  %vm884_vm11 = vcmp.eq.f32.partialorder %v2662_v55, %v882_v28 }
 0xe3c   :  { %vm883_vm12 = vcmp.eq.f32.partialorder %v2662_v55, %v876_v29 }
 0xe3d   :  { %vm885_vm13 = vmor %vm883_vm12, %vm884_vm11 }
 0xe3e   :  { %v1970_v30 = vsel %vm885_vm13, 1.0, %v2482_v9 }
 0xe3f   :  { %2207 = vmatmul.mubr.msk.f32.vlgmr.msra.gmra.mrb[10].mxu1 %vm126_vm6, %v1970_v30 }
 0xe40   :  { %2375 = vmatpush3.bf16.msra.mxu1 %v2537_v5  ;;  %2228 = vmatprep.mubr.msk.f32.mxu1 %vm2481_vm0, %v2482_v9 }
 0xe41   :  { %2376 = vmatprep.subr.bf16.mxu1 %v2480_v0 }
 0xe44   :  { %2378 = vmatpush3.bf16.msra.mxu1 %v2557_v12 }
 0xe45   :  { %2382 = vmatprep.subr.bf16.mxu1 %v2480_v0 }
 0xf12   :  { %v1027_v31 = vpop.f32.mrb[10].mxu1 }
 0xf13   :  { %v1028_v32 = vadd.f32 %v1027_v31, %v954_v8  ;;  %v2208_v33 = vpop.f32.mrb[11].mxu1 }
 0xf15   :  { %v1031_v34 = vadd.f32 %v2595_v17, %v1028_v32 }
 0xf17   :  { %2448 = vtanh.f32 %v1031_v34  ;;  %v1974_v36 = vmul.f32 -1.442695, %v1031_v34 }
 0xf19   :  { %2450 = vpow2.f32 %v1974_v36 }
 0xf21   :  { %v2449_v35 = vpop.eup %2448 }
 0xf22   :  { %1041 = vrot.lane.b32.xlu0 %v2449_v35, %s2483_s18 }
 0xf23   :  { %v2451_v37 = vpop.eup %2450 }
 0xf24   :  { %v1035_v39 = vadd.f32 1.0, %v2451_v37 }
 0xf26   :  { %2452 = vrcp.f32 %v1035_v39 }
 0xf30   :  { %v2453_v41 = vpop.eup %2452 }
 0xf31   :  { %v1039_v44 = vmul.f32 %v2453_v41, %v2745_v1 }
 0xf94   :  { %v1042_v42 = vpop.permute.xlu0 %1041 }
 0xf95   :  { %v1044_v43 = vmul.f32 %v2453_v41, %v1042_v42 }
 0xf97   :  { %1046 = vrot.lane.b32.xlu1 %v1044_v43, %s2484_s21 }
0x1009   :  { %v1047_v46 = vpop.permute.xlu1 %1046 }
0x100a   :  { %v2798_v47 = vadd.f32 %v1047_v46, %v1039_v44 }
0x100c   :  { %2454 = vtanh.f32 %v2798_v47 }
0x1016   :  { %v2455_v48 = vpop.eup %2454 }
0x1017   :  { %1052 = vrot.lane.b32.xlu1 %v2455_v48, %s2483_s18 }
0x1089   :  { %v1053_v49 = vpop.permute.xlu1 %1052 }
0x108a   :  { %v1055_v50 = vmul.f32 %v2453_v41, %v1053_v49 }
0x108c   :  { %1057 = vrot.lane.b32.xlu0 %v1055_v50, %s2484_s21 }
0x10fe   :  { %v1058_v51 = vpop.permute.xlu0 %1057 }
0x10ff   :  { %2218 = vmatmul.mubr.msk.f32.vlgmr.msra.gmra.mrb[10].mxu0 %vm52_vm7, %v1058_v51  ;;  %2229 = vmatmul.mubr.msk.f32.vlgmr.msra.gmra.mrb[12].mxu1 %vm52_vm7, %v1058_v51 }
0x1100   :  { %2381 = vmatpush3.bf16.msra.mxu0 %v2552_v10  ;;  %2237 = vmatprep.mubr.msk.f32.mxu0 %vm2481_vm0, %v2482_v9 }
0x1101   :  { %2235 = vmatprep.subr.mxu0 %v2482_v9  ;;  %2384 = vmatpush3.bf16.msra.mxu1 %v2616_v38 }
0x1102   :  { %2385 = vmatprep.subr.bf16.mxu1 %v2480_v0  ;;  %2248 = vmatprep.mubr.msk.f32.mxu1 %vm2481_vm0, %v2482_v9 }
0x1104   :  { %2236 = vmatpush3.msk.msra.mxu0 %vm130_vm3, %v2567_v13 }
0x1105   :  { %2388 = vmatprep.subr.bf16.mxu0 %v2480_v0  ;;  %2387 = vmatpush3.bf16.msra.mxu1 %v2622_v40 }
0x1106   :  { %2394 = vmatprep.subr.bf16.mxu1 %v2480_v0 }
0x11d2   :  { %v1127_v52 = vpop.f32.mrb[10].mxu0  ;;  %v1224_v53 = vpop.f32.mrb[12].mxu1 }
0x11d3   :  { %v1128_v54 = vadd.f32 %v2647_v45, %v1127_v52  ;;  %v2219_v57 = vpop.f32.mrb[11].mxu0  ;;  %v2230_v58 = vpop.f32.mrb[13].mxu1 }
0x11d5   :  { %1976 = vst.msk [vmem:[%s2960_s7 + $0x8] sm:$0x3] %vm48_vm5, %v1128_v54  ;;  %v1137_v59 = vsel %vm42_vm8, -1e+30, %v1128_v54  ;;  %v1133_v60 = vsel %vm42_vm8, %v1128_v54, -1e+30 }
0x11d6   :  { %v1138_v61 = vsel %vm48_vm5, %v1137_v59, -inf  ;;  %v1134_v62 = vsel %vm48_vm5, %v1133_v60, -inf }
0x11d7   :  { %1139 = vmax.xlane.f32.xlu0 %v1138_v61  ;;  %1135 = vmax.xlane.f32.xlu1 %v1134_v62 }
0x1264   :  { %v1140_v63 = vpop.xlane.xlu0 %1139  ;;  %v1136_v1 = vpop.xlane.xlu1 %1135 }
0x1265   :  { %vm1147_vm14 = vcmp.ge.f32.partialorder %v1128_v54, %v1140_v63  ;;  %vm1141_vm15 = vcmp.ge.f32.partialorder %v1128_v54, %v1136_v1 }
0x1266   :  { %vm1148_vm1 = vmand %vm2666_vm10, %vm1147_vm14 }
0x1267   :  { %vm1142_vm2 = vmand %vm42_vm8, %vm1141_vm15  ;;  %v1149_v2 = vsel %vm1148_vm1, %v2662_v55, 18.0 }
0x1268   :  { %v1150_v3 = vsel %vm48_vm5, %v1149_v2, inf  ;;  %v1143_v4 = vsel %vm1142_vm2, %v2662_v55, 18.0 }
0x1269   :  { %1151 = vmin.xlane.f32.xlu1 %v1150_v3  ;;  %v1144_v6 = vsel %vm48_vm5, %v1143_v4, inf }
0x126a   :  { %1145 = vmin.xlane.f32.xlu0 %v1144_v6 }
0x12f6   :  { %v1152_v7 = vpop.xlane.xlu1 %1151 }
0x12f7   :  { %v1146_v8 = vpop.xlane.xlu0 %1145  ;;  %vm1154_vm4 = vcmp.eq.f32.partialorder %v2662_v55, %v1152_v7 }
0x12f8   :  { %vm1153_vm9 = vcmp.eq.f32.partialorder %v2662_v55, %v1146_v8 }
0x12f9   :  { %vm1155_vm11 = vmor %vm1153_vm9, %vm1154_vm4 }
0x12fa   :  { %v1977_v14 = vsel %vm1155_vm11, 1.0, %v2482_v9 }
0x12fb   :  { %2238 = vmatmul.mubr.msk.f32.vlgmr.msra.gmra.mrb[12].mxu0 %vm126_vm6, %v1977_v14 }
0x12fc   :  { %2390 = vmatpush3.bf16.msra.mxu0 %v2537_v5  ;;  %2259 = vmatprep.mubr.msk.f32.mxu0 %vm2481_vm0, %v2482_v9 }
0x12fd   :  { %2391 = vmatprep.subr.bf16.mxu0 %v2480_v0 }
0x1300   :  { %2393 = vmatpush3.bf16.msra.mxu0 %v2557_v12 }
0x1301   :  { %2397 = vmatprep.subr.bf16.mxu0 %v2480_v0 }
0x13ce   :  { %v1297_v15 = vpop.f32.mrb[12].mxu0 }
0x13cf   :  { %v1298_v16 = vadd.f32 %v1297_v15, %v1224_v53  ;;  %v2239_v18 = vpop.f32.mrb[13].mxu0 }
0x13d1   :  { %v1301_v19 = vadd.f32 %v2595_v17, %v1298_v16 }
0x13d3   :  { %2456 = vtanh.f32 %v1301_v19  ;;  %v1981_v21 = vmul.f32 -1.442695, %v1301_v19 }
0x13d5   :  { %2458 = vpow2.f32 %v1981_v21 }
0x13dd   :  { %v2457_v20 = vpop.eup %2456 }
0x13de   :  { %1311 = vrot.lane.b32.xlu0 %v2457_v20, %s2483_s18 }
0x13df   :  { %v2459_v22 = vpop.eup %2458 }
0x13e0   :  { %v1305_v23 = vadd.f32 1.0, %v2459_v22 }
0x13e2   :  { %2460 = vrcp.f32 %v1305_v23 }
0x13ec   :  { %v2461_v24 = vpop.eup %2460 }
0x13ed   :  { %v1309_v27 = vmul.f32 %v2461_v24, %v2798_v47 }
0x1450   :  { %v1312_v25 = vpop.permute.xlu0 %1311 }
0x1451   :  { %v1314_v26 = vmul.f32 %v2461_v24, %v1312_v25 }
0x1453   :  { %1316 = vrot.lane.b32.xlu1 %v1314_v26, %s2484_s21 }
0x14c5   :  { %v1317_v28 = vpop.permute.xlu1 %1316 }
0x14c6   :  { %v2851_v29 = vadd.f32 %v1317_v28, %v1309_v27 }
0x14c8   :  { %2462 = vtanh.f32 %v2851_v29 }
0x14d2   :  { %v2463_v30 = vpop.eup %2462 }
0x14d3   :  { %1322 = vrot.lane.b32.xlu1 %v2463_v30, %s2483_s18 }
0x1545   :  { %v1323_v31 = vpop.permute.xlu1 %1322 }
0x1546   :  { %v1325_v32 = vmul.f32 %v2461_v24, %v1323_v31 }
0x1548   :  { %1327 = vrot.lane.b32.xlu0 %v1325_v32, %s2484_s21 }
0x15ba   :  { %v1328_v33 = vpop.permute.xlu0 %1327 }
0x15bb   :  { %2249 = vmatmul.mubr.msk.f32.vlgmr.msra.gmra.mrb[14].mxu1 %vm52_vm7, %v1328_v33  ;;  %2260 = vmatmul.mubr.msk.f32.vlgmr.msra.gmra.mrb[14].mxu0 %vm52_vm7, %v1328_v33 }
0x15bc   :  { %2396 = vmatpush3.bf16.msra.mxu1 %v2552_v10  ;;  %2268 = vmatprep.mubr.msk.f32.mxu1 %vm2481_vm0, %v2482_v9 }
0x15bd   :  { %2266 = vmatprep.subr.mxu1 %v2482_v9  ;;  %2399 = vmatpush3.bf16.msra.mxu0 %v2616_v38 }
0x15be   :  { %2400 = vmatprep.subr.bf16.mxu0 %v2480_v0  ;;  %2279 = vmatprep.mubr.msk.f32.mxu0 %vm2481_vm0, %v2482_v9 }
0x15c0   :  { %2267 = vmatpush3.msk.msra.mxu1 %vm130_vm3, %v2567_v13 }
0x15c1   :  { %2403 = vmatprep.subr.bf16.mxu1 %v2480_v0  ;;  %2402 = vmatpush3.bf16.msra.mxu0 %v2622_v40 }
0x15c2   :  { %2409 = vmatprep.subr.bf16.mxu0 %v2480_v0 }
0x168e   :  { %v1397_v34 = vpop.f32.mrb[14].mxu1  ;;  %v1494_v35 = vpop.f32.mrb[14].mxu0 }
0x168f   :  { %v1398_v36 = vadd.f32 %v2647_v45, %v1397_v34  ;;  %v2250_v37 = vpop.f32.mrb[15].mxu1  ;;  %v2261_v39 = vpop.f32.mrb[15].mxu0 }
0x1691   :  { %1983 = vst.msk [vmem:[%s2960_s7 + $0xa] sm:$0x3] %vm48_vm5, %v1398_v36  ;;  %v1407_v41 = vsel %vm42_vm8, -1e+30, %v1398_v36  ;;  %v1403_v42 = vsel %vm42_vm8, %v1398_v36, -1e+30 }
0x1692   :  { %v1408_v43 = vsel %vm48_vm5, %v1407_v41, -inf  ;;  %v1404_v44 = vsel %vm48_vm5, %v1403_v42, -inf }
0x1693   :  { %1409 = vmax.xlane.f32.xlu0 %v1408_v43  ;;  %1405 = vmax.xlane.f32.xlu1 %v1404_v44 }
0x1720   :  { %v1410_v46 = vpop.xlane.xlu0 %1409  ;;  %v1406_v47 = vpop.xlane.xlu1 %1405 }
0x1721   :  { %vm1417_vm12 = vcmp.ge.f32.partialorder %v1398_v36, %v1410_v46  ;;  %vm1411_vm13 = vcmp.ge.f32.partialorder %v1398_v36, %v1406_v47 }
0x1722   :  { %vm1418_vm14 = vmand %vm2666_vm10, %vm1417_vm12 }
0x1723   :  { %vm1412_vm15 = vmand %vm42_vm8, %vm1411_vm13  ;;  %v1419_v48 = vsel %vm1418_vm14, %v2662_v55, 18.0 }
0x1724   :  { %v1420_v49 = vsel %vm48_vm5, %v1419_v48, inf  ;;  %v1413_v50 = vsel %vm1412_vm15, %v2662_v55, 18.0 }
0x1725   :  { %1421 = vmin.xlane.f32.xlu1 %v1420_v49  ;;  %v1414_v51 = vsel %vm48_vm5, %v1413_v50, inf }
0x1726   :  { %1415 = vmin.xlane.f32.xlu0 %v1414_v51 }
0x17b2   :  { %v1422_v52 = vpop.xlane.xlu1 %1421 }
0x17b3   :  { %v1416_v53 = vpop.xlane.xlu0 %1415  ;;  %vm1424_vm1 = vcmp.eq.f32.partialorder %v2662_v55, %v1422_v52 }
0x17b4   :  { %vm1423_vm2 = vcmp.eq.f32.partialorder %v2662_v55, %v1416_v53 }
0x17b5   :  { %vm1425_vm4 = vmor %vm1423_vm2, %vm1424_vm1 }
0x17b6   :  { %v1984_v54 = vsel %vm1425_vm4, 1.0, %v2482_v9 }
0x17b7   :  { %2269 = vmatmul.mubr.msk.f32.vlgmr.msra.gmra.mrb[16].mxu1 %vm126_vm6, %v1984_v54 }
0x17b8   :  { %2405 = vmatpush3.bf16.msra.mxu1 %v2537_v5  ;;  %2290 = vmatprep.mubr.msk.f32.mxu1 %vm2481_vm0, %v2482_v9 }
0x17b9   :  { %2406 = vmatprep.subr.bf16.mxu1 %v2480_v0 }
0x17bc   :  { %2408 = vmatpush3.bf16.msra.mxu1 %v2557_v12 }
0x17bd   :  { %2412 = vmatprep.subr.bf16.mxu1 %v2480_v0 }
0x188a   :  { %v1567_v57 = vpop.f32.mrb[16].mxu1 }
0x188b   :  { %v1568_v58 = vadd.f32 %v1567_v57, %v1494_v35  ;;  %v2270_v59 = vpop.f32.mrb[17].mxu1 }
0x188d   :  { %v1571_v60 = vadd.f32 %v2595_v17, %v1568_v58 }
0x188f   :  { %2464 = vtanh.f32 %v1571_v60  ;;  %v1988_v62 = vmul.f32 -1.442695, %v1571_v60 }
0x1891   :  { %2466 = vpow2.f32 %v1988_v62 }
0x1899   :  { %v2465_v61 = vpop.eup %2464 }
0x189a   :  { %1581 = vrot.lane.b32.xlu0 %v2465_v61, %s2483_s18 }
0x189b   :  { %v2467_v5 = vpop.eup %2466 }
0x189c   :  { %v1575_v63 = vadd.f32 1.0, %v2467_v5 }
0x189e   :  { %2468 = vrcp.f32 %v1575_v63 }
0x18a8   :  { %v2469_v1 = vpop.eup %2468 }
0x18a9   :  { %v1579_v12 = vmul.f32 %v2469_v1, %v2851_v29 }
0x190c   :  { %v1582_v2 = vpop.permute.xlu0 %1581 }
0x190d   :  { %v1584_v3 = vmul.f32 %v2469_v1, %v1582_v2 }
0x190f   :  { %1586 = vrot.lane.b32.xlu1 %v1584_v3, %s2484_s21 }
0x1981   :  { %v1587_v4 = vpop.permute.xlu1 %1586 }
0x1982   :  { %v2904_v6 = vadd.f32 %v1587_v4, %v1579_v12 }
0x1984   :  { %2470 = vtanh.f32 %v2904_v6 }
0x198e   :  { %v2471_v7 = vpop.eup %2470 }
0x198f   :  { %1592 = vrot.lane.b32.xlu1 %v2471_v7, %s2483_s18 }
0x1a01   :  { %v1593_v8 = vpop.permute.xlu1 %1592 }
0x1a02   :  { %v1595_v14 = vmul.f32 %v2469_v1, %v1593_v8 }
0x1a04   :  { %1597 = vrot.lane.b32.xlu0 %v1595_v14, %s2484_s21 }
0x1a76   :  { %v1598_v15 = vpop.permute.xlu0 %1597 }
0x1a77   :  { %2280 = vmatmul.mubr.msk.f32.vlgmr.msra.gmra.mrb[16].mxu0 %vm52_vm7, %v1598_v15  ;;  %2291 = vmatmul.mubr.msk.f32.vlgmr.msra.gmra.mrb[18].mxu1 %vm52_vm7, %v1598_v15 }
0x1a78   :  { %2411 = vmatpush3.bf16.msra.mxu0 %v2552_v10  ;;  %2299 = vmatprep.mubr.msk.f32.mxu0 %vm2481_vm0, %v2482_v9 }
0x1a79   :  { %2297 = vmatprep.subr.mxu0 %v2482_v9  ;;  %2414 = vmatpush3.bf16.msra.mxu1 %v2616_v38 }
0x1a7a   :  { %2415 = vmatprep.subr.bf16.mxu1 %v2480_v0  ;;  %2310 = vmatprep.mubr.msk.f32.mxu1 %vm2481_vm0, %v2482_v9 }
0x1a7c   :  { %2298 = vmatpush3.msk.msra.mxu0 %vm130_vm3, %v2567_v13 }
0x1a7d   :  { %2417 = vmatpush3.bf16.msra.mxu1 %v2622_v40 }
0x1b4a   :  { %v1667_v16 = vpop.f32.mrb[16].mxu0  ;;  %v1764_v18 = vpop.f32.mrb[18].mxu1 }
0x1b4b   :  { %v1668_v10 = vadd.f32 %v2647_v45, %v1667_v16  ;;  %v2281_v19 = vpop.f32.mrb[17].mxu0  ;;  %v2292_v20 = vpop.f32.mrb[19].mxu1 }
0x1b4d   :  { %1990 = vst.msk [vmem:[%s2960_s7 + $0xc] sm:$0x3] %vm48_vm5, %v1668_v10  ;;  %v1677_v0 = vsel %vm42_vm8, -1e+30, %v1668_v10  ;;  %v1673_v38 = vsel %vm42_vm8, %v1668_v10, -1e+30 }
0x1b4e   :  { %v1678_v13 = vsel %vm48_vm5, %v1677_v0, -inf  ;;  %v1674_v40 = vsel %vm48_vm5, %v1673_v38, -inf }
0x1b4f   :  { %1679 = vmax.xlane.f32.xlu0 %v1678_v13  ;;  %1675 = vmax.xlane.f32.xlu1 %v1674_v40 }
0x1bdc   :  { %v1680_v21 = vpop.xlane.xlu0 %1679  ;;  %v1676_v22 = vpop.xlane.xlu1 %1675 }
0x1bdd   :  { %vm1687_vm0 = vcmp.ge.f32.partialorder %v1668_v10, %v1680_v21  ;;  %vm1681_vm3 = vcmp.ge.f32.partialorder %v1668_v10, %v1676_v22 }
0x1bde   :  { %vm1688_vm9 = vmand %vm2666_vm10, %vm1687_vm0 }
0x1bdf   :  { %vm1682_vm11 = vmand %vm42_vm8, %vm1681_vm3  ;;  %v1689_v23 = vsel %vm1688_vm9, %v2662_v55, 18.0 }
0x1be0   :  { %v1690_v24 = vsel %vm48_vm5, %v1689_v23, inf  ;;  %v1683_v25 = vsel %vm1682_vm11, %v2662_v55, 18.0 }
0x1be1   :  { %1691 = vmin.xlane.f32.xlu1 %v1690_v24  ;;  %v1684_v26 = vsel %vm48_vm5, %v1683_v25, inf }
0x1be2   :  { %1685 = vmin.xlane.f32.xlu0 %v1684_v26 }
0x1c6e   :  { %v1692_v27 = vpop.xlane.xlu1 %1691 }
0x1c6f   :  { %v1686_v28 = vpop.xlane.xlu0 %1685  ;;  %vm1694_vm12 = vcmp.eq.f32.partialorder %v2662_v55, %v1692_v27 }
0x1c70   :  { %vm1693_vm13 = vcmp.eq.f32.partialorder %v2662_v55, %v1686_v28 }
0x1c71   :  { %vm1695_vm10 = vmor %vm1693_vm13, %vm1694_vm12 }
0x1c72   :  { %v1991_v11 = vsel %vm1695_vm10, 1.0, %v2482_v9 }
0x1c73   :  { %2300 = vmatmul.mubr.msk.f32.vlgmr.msra.gmra.mrb[18].mxu0 %vm126_vm6, %v1991_v11 }
0x1d46   :  { %v1837_v56 = vpop.f32.mrb[18].mxu0 }
0x1d47   :  { %v1838_v29 = vadd.f32 %v1837_v56, %v1764_v18  ;;  %v2301_v30 = vpop.f32.mrb[19].mxu0 }
0x1d49   :  { %v1841_v31 = vadd.f32 %v2595_v17, %v1838_v29 }
0x1d4b   :  { %2472 = vtanh.f32 %v1841_v31  ;;  %v1995_v33 = vmul.f32 -1.442695, %v1841_v31 }
0x1d4d   :  { %2474 = vpow2.f32 %v1995_v33 }
0x1d55   :  { %v2473_v32 = vpop.eup %2472 }
0x1d56   :  { %1851 = vrot.lane.b32.xlu0 %v2473_v32, %s2483_s18 }
0x1d57   :  { %v2475_v34 = vpop.eup %2474 }
0x1d58   :  { %v1845_v35 = vadd.f32 1.0, %v2475_v34 }
0x1d5a   :  { %2476 = vrcp.f32 %v1845_v35 }
0x1d64   :  { %v2477_v55 = vpop.eup %2476 }
0x1d65   :  { %v1849_v9 = vmul.f32 %v2477_v55, %v2904_v6 }
0x1dc8   :  { %v1852_v36 = vpop.permute.xlu0 %1851 }
0x1dc9   :  { %v1854_v37 = vmul.f32 %v2477_v55, %v1852_v36 }
0x1dcb   :  { %1856 = vrot.lane.b32.xlu1 %v1854_v37, %s2484_s21 }
0x1e3d   :  { %v1857_v39 = vpop.permute.xlu1 %1856 }
0x1e3e   :  { %v1859_v41 = vadd.f32 %v1857_v39, %v1849_v9 }
0x1e40   :  { %2478 = vtanh.f32 %v1859_v41 }
0x1e4a   :  { %v2479_v17 = vpop.eup %2478 }
0x1e4b   :  { %1862 = vrot.lane.b32.xlu1 %v2479_v17, %s2483_s18 }
0x1ebd   :  { %v1863_v42 = vpop.permute.xlu1 %1862 }
0x1ebe   :  { %v1865_v43 = vmul.f32 %v2477_v55, %v1863_v42 }
0x1ec0   :  { %1867 = vrot.lane.b32.xlu0 %v1865_v43, %s2484_s21 }
0x1f32   :  { %v1868_v44 = vpop.permute.xlu0 %1867 }
0x1f33   :  { %2311 = vmatmul.mubr.msk.f32.vlgmr.msra.gmra.mrb[20].mxu1 %vm52_vm7, %v1868_v44 }
0x2006   :  { %v1937_v46 = vpop.f32.mrb[20].mxu1 }
0x2007   :  { %v1938_v47 = vadd.f32 %v2647_v45, %v1937_v46  ;;  %v2312_v48 = vpop.f32.mrb[21].mxu1 }
0x2009   :  { %1997 = vst.msk [vmem:[%s2960_s7 + $0xe] sm:$0x3] %vm48_vm5, %v1938_v47 }

</bundles_post_ra>
